<compile_context>
chip_gen: v7x
topology: tpu7x:2x2x1
jax: 0.10.0
libtpu: 0.0.40
codegen_flags: <defaults>
</compile_context>

<pallas_src>
import functools

import jax
import jax.numpy as jnp
from jax.experimental import pallas as pl
from jax.experimental.pallas import tpu as pltpu

BN_EPS = 1e-5


def _fused_head_kernel(feat_ref, wt_ref, b_ref, logit_map_ref, logit_ref, *,
                       tb, s, k_total):
    """Fused classifier head for ALL columns, one batch-tile per grid step.

    feat_ref      : (TB*S, C)   feature rows (channels-last flat), C on lanes
    wt_ref        : (C, 2K)     [w_all | w_bn_folded]
    b_ref         : (1, 2K)     [b_all | b_bn_folded]   (f32)
    logit_map_ref : (TB*S, K)   per-pixel logits (channels-last flat order)
    logit_ref     : (TB, 1, K)  pooled + BN + fc logits
    """
    # One MXU matmul covering both the raw and the BN-folded weight copies.
    out = jnp.dot(feat_ref[...], wt_ref[...],
                  preferred_element_type=jnp.float32) + b_ref[...]   # (TB*S, 2K) f32

    # First K output columns: logit_map = classifier(feat_map)  (1x1 conv).
    logit_map_ref[...] = out[:, :k_total].astype(logit_map_ref.dtype)

    # Last K columns: logit = fc(BN(avg_pool(feat))) == spatial mean of the
    # BN-folded half (pooling commutes with the 1x1 conv; dropout p=0 / eval
    # is identity).  The reshape only regroups whole sublane tiles (S % 8 == 0).
    fold = out[:, k_total:].reshape(tb, s, k_total)
    logit_ref[...] = jnp.mean(fold, axis=1, keepdims=True)           # (TB, 1, K)


def _choose_block_batch(n, c, s, itemsize, *,
                        target_bytes=1 << 20, vmem_budget=4 << 20):
    """Pick a batch tile so the feat block is ~1 MiB, double-buffers cheaply
    everywhere (v5e 16 MiB / v7x 32 MiB scoped defaults), keeps the grid
    length >= 2 (v7x megacore), and divides N."""
    per_elem = c * s * itemsize
    tb = max(1, target_bytes // per_elem)
    tb = min(tb, max(1, vmem_budget // (2 * per_elem)))   # 2x double-buffer
    tb = min(tb, max(1, n // 2))                          # grid length >= 2
    tb = max(1, min(tb, n))
    while n % tb:                                         # must divide N
        tb -= 1
    return int(tb)


def _run_fused(feat_2d, wt_cat, b_cat, *, n, s, k_total, tb):
    ns, c = feat_2d.shape
    k2 = wt_cat.shape[1]
    kernel = functools.partial(_fused_head_kernel, tb=tb, s=s, k_total=k_total)
    return pl.pallas_call(
        kernel,
        out_shape=(
            jax.ShapeDtypeStruct((n * s, k_total), jnp.float32),  # logit_map (flat)
            jax.ShapeDtypeStruct((n, 1, k_total), jnp.float32),   # pooled logits
        ),
        grid=(n // tb,),
        in_specs=[
            pl.BlockSpec((tb * s, c), lambda i: (i, 0)),   # feat tile (pipelined)
            pl.BlockSpec((c, k2), lambda i: (0, 0)),       # weights (tiny)
            pl.BlockSpec((1, k2), lambda i: (0, 0)),       # biases (tiny)
        ],
        out_specs=(
            pl.BlockSpec((tb * s, k_total), lambda i: (i, 0)),
            pl.BlockSpec((tb, 1, k_total), lambda i: (i, 0, 0)),
        ),
        compiler_params=pltpu.CompilerParams(
            dimension_semantics=("parallel",)),
    )(feat_2d, wt_cat, b_cat)


def _fold_params(params, compute_dtype):
    """Concatenate all columns and fold eval-mode BatchNorm into a second copy
    of the weights: w' = a*w, b' = (beta - rmean*a) @ w + b, a = gamma*rsqrt(var+eps)."""
    ws, bs, wfs, bfs, ks = [], [], [], [], []
    for p in params:
        w = p['w'].astype(jnp.float32)                 # (C, K)
        b = p['b'].reshape(-1).astype(jnp.float32)     # (K,)
        gamma = p['gamma'].reshape(-1).astype(jnp.float32)
        beta = p['beta'].reshape(-1).astype(jnp.float32)
        rmean = p['rmean'].reshape(-1).astype(jnp.float32)
        rvar = p['rvar'].reshape(-1).astype(jnp.float32)
        a = gamma * jax.lax.rsqrt(rvar + BN_EPS)       # (C,)
        shift = beta - rmean * a                       # (C,)
        ws.append(w)
        bs.append(b)
        wfs.append(a[:, None] * w)
        bfs.append(shift @ w + b)
        ks.append(w.shape[1])
    k_total = sum(ks)
    w_all = jnp.concatenate(ws, axis=1)                # (C, K_total)
    w_fold = jnp.concatenate(wfs, axis=1)              # (C, K_total)
    wt_cat = jnp.concatenate([w_all, w_fold], axis=1).astype(compute_dtype)  # (C, 2K)
    b_cat = jnp.concatenate([jnp.concatenate(bs),
                             jnp.concatenate(bfs)])[None, :]                 # (1, 2K) f32
    return wt_cat, b_cat, ks, k_total


def classifier_forward(feat_map, params, *, channels_last=False, block_batch=None):
    """Mirrors Classifier.forward after the backbone (eval mode).

    feat_map: (N, H, W, C) if channels_last else (N, C, H, W) like PyTorch.
    params:   per-column dicts with keys w, b, gamma, beta, rmean, rvar.
    Returns (logits, logit_maps) with PyTorch conventions:
      logits[i]     : (N, num_class_i)             (== logit.squeeze() for N > 1)
      logit_maps[i] : (N, num_class_i, H, W)       (NCHW)
    """
    if channels_last:
        n, h, w_, c = feat_map.shape
        feat_nsc = feat_map.reshape(n, h * w_, c)            # free reshape
    else:
        n, c, h, w_ = feat_map.shape
        # TODO(synk): emit the backbone feature map channels-last (JAX conv
        # default) and pass channels_last=True; this transpose costs one extra
        # HBM pass just to get the 512-channel axis onto the 128-lane axis.
        feat_nsc = jnp.transpose(feat_map, (0, 2, 3, 1)).reshape(n, h * w_, c)
    s = h * w_

    wt_cat, b_cat, ks, k_total = _fold_params(params, feat_nsc.dtype)

    tb = (block_batch if block_batch is not None else
          _choose_block_batch(n, c, s, jnp.dtype(feat_nsc.dtype).itemsize))

    feat_2d = feat_nsc.reshape(n * s, c)                     # free reshape
    logit_map_flat, logit_all = _run_fused(
        feat_2d, wt_cat, b_cat, n=n, s=s, k_total=k_total, tb=tb)

    # Tiny outputs -> PyTorch conventions on the host.
    logit_map_all = logit_map_flat.reshape(n, h, w_, k_total).transpose(0, 3, 1, 2)
    logit_all = logit_all[:, 0, :]                           # (N, K_total)

    logits, logit_maps = [], []
    off = 0
    for k in ks:
        logit_maps.append(logit_map_all[:, off:off + k])
        logits.append(logit_all[:, off:off + k])
        off += k
    return logits, logit_maps


def init_params(key, num_features, num_classes, randomize_bn=False):
    """Parameter init matching the PyTorch module's __init__ (vgg19, expand=1)."""
    params = []
    for idx, k in enumerate(num_classes):
        ck = jax.random.fold_in(key, idx)
        k_w, k_g, k_b, k_m, k_v = jax.random.split(ck, 5)
        # Conv2d(num_features, k, 1): weight ~ N(0, 0.01), bias = 0.
        w = 0.01 * jax.random.normal(k_w, (num_features, k), dtype=jnp.float32)
        b = jnp.zeros((1, k), dtype=jnp.float32)
        if randomize_bn:
            gamma = 1.0 + 0.1 * jax.random.normal(k_g, (1, num_features), dtype=jnp.float32)
            beta = 0.1 * jax.random.normal(k_b, (1, num_features), dtype=jnp.float32)
            rmean = 0.1 * jax.random.normal(k_m, (1, num_features), dtype=jnp.float32)
            rvar = jax.random.uniform(k_v, (1, num_features), dtype=jnp.float32,
                                      minval=0.5, maxval=1.5)
        else:
            gamma = jnp.ones((1, num_features), dtype=jnp.float32)
            beta = jnp.zeros((1, num_features), dtype=jnp.float32)
            rmean = jnp.zeros((1, num_features), dtype=jnp.float32)
            rvar = jnp.ones((1, num_features), dtype=jnp.float32)
        params.append(dict(w=w, b=b, gamma=gamma, beta=beta, rmean=rmean, rvar=rvar))
    return params


if __name__ == "__main__":
    key = jax.random.PRNGKey(0)
    kf, kp = jax.random.split(key)

    # vgg19 head: 512 feature channels; small 8x8 spatial map, batch 8.
    N, H, W, C = 8, 8, 8, 512
    num_classes = [5, 3]

    feat_nhwc = jax.random.normal(kf, (N, H, W, C), dtype=jnp.float32)
    feat_nchw = jnp.transpose(feat_nhwc, (0, 3, 1, 2))
    params = init_params(kp, C, num_classes, randomize_bn=True)

    # Preferred path: channels-last feature map straight from a JAX backbone.
    logits, logit_maps = classifier_forward(feat_nhwc, params, channels_last=True)
    jax.block_until_ready((logits, logit_maps))

    # Pure-JAX reference of the PyTorch eval-mode forward (post-backbone).
    for i, k in enumerate(num_classes):
        p = params[i]
        ref_lm = (jnp.einsum('nchw,ck->nkhw', feat_nchw, p['w'])
                  + p['b'][0][None, :, None, None])
        pooled = jnp.mean(feat_nchw, axis=(2, 3))                     # (N, C)
        normed = ((pooled - p['rmean']) / jnp.sqrt(p['rvar'] + BN_EPS)
                  * p['gamma'] + p['beta'])
        ref_logit = normed @ p['w'] + p['b'][0]
        assert logits[i].shape == (N, k)
        assert logit_maps[i].shape == (N, k, H, W)
        assert jnp.allclose(logit_maps[i], ref_lm, atol=1e-3, rtol=1e-3)
        assert jnp.allclose(logits[i], ref_logit, atol=1e-3, rtol=1e-3)

    # Compatibility path: NCHW input (PyTorch layout) -> identical results.
    logits_nchw, maps_nchw = classifier_forward(feat_nchw, params, channels_last=False)
    for i in range(len(num_classes)):
        assert jnp.allclose(logits_nchw[i], logits[i], atol=1e-5, rtol=1e-5)
        assert jnp.allclose(maps_nchw[i], logit_maps[i], atol=1e-5, rtol=1e-5)

    # bf16 feature map (halves the dominant HBM read), f32 accumulation.
    logits_bf, maps_bf = classifier_forward(
        feat_nhwc.astype(jnp.bfloat16), params, channels_last=True)
    for i in range(len(num_classes)):
        assert jnp.allclose(logits_bf[i], logits[i], atol=2e-2, rtol=2e-2)
        assert jnp.allclose(maps_bf[i], logit_maps[i], atol=2e-2, rtol=2e-2)

    print("KERNEL_OK")
</pallas_src>

<mosaic_0001>
module attributes {stable_mosaic.version = 11 : i64} {
  func.func @_fused_head_kernel(%arg0: i32, %arg1: memref<256x512xf32, #tpu.memory_space<vmem>>, %arg2: memref<512x16xf32, #tpu.memory_space<vmem>>, %arg3: memref<1x16xf32, #tpu.memory_space<vmem>>, %arg4: memref<256x8xf32, #tpu.memory_space<vmem>>, %arg5: memref<4x1x8xf32, #tpu.memory_space<vmem>>) attributes {dimension_semantics = [#tpu.dimension_semantics<parallel>], iteration_bounds = array<i64: 2>, scalar_prefetch = 0 : i64, scratch_operands = 0 : i64, tpu.core_type = #tpu.core_type<tc>, window_params = [{transform_indices = @transform_0, window_bounds = array<i64: 256, 512>}, {pipeline_mode = #tpu.pipeline_mode<synchronous>, transform_indices = @transform_1, window_bounds = array<i64: 512, 16>}, {pipeline_mode = #tpu.pipeline_mode<synchronous>, transform_indices = @transform_2, window_bounds = array<i64: 1, 16>}, {transform_indices = @transform_3, window_bounds = array<i64: 256, 8>}, {transform_indices = @transform_4, window_bounds = array<i64: 4, 1, 8>}]} {
    %c0 = arith.constant 0 : index
    %c0_0 = arith.constant 0 : index
    %0 = vector.load %arg1[%c0, %c0_0] : memref<256x512xf32, #tpu.memory_space<vmem>>, vector<256x512xf32>
    %c0_1 = arith.constant 0 : index
    %c0_2 = arith.constant 0 : index
    %1 = vector.load %arg2[%c0_1, %c0_2] : memref<512x16xf32, #tpu.memory_space<vmem>>, vector<512x16xf32>
    %cst = arith.constant dense<0.000000e+00> : vector<256x16xf32>
    %2 = tpu.matmul %0, %1, %cst {dimension_numbers = #tpu.dot_dimension_numbers<[1], [0], [0], [1], [0, 0, 1, 1], [], []>} : vector<256x512xf32>, vector<512x16xf32>, vector<256x16xf32> -> vector<256x16xf32>
    %c0_3 = arith.constant 0 : index
    %c0_4 = arith.constant 0 : index
    %3 = vector.load %arg3[%c0_3, %c0_4] : memref<1x16xf32, #tpu.memory_space<vmem>>, vector<1x16xf32>
    %4 = vector.broadcast %3 : vector<1x16xf32> to vector<256x16xf32>
    %5 = arith.addf %2, %4 : vector<256x16xf32>
    %6 = vector.extract_strided_slice %5 {offsets = [0, 0], sizes = [256, 8], strides = [1, 1]} : vector<256x16xf32> to vector<256x8xf32>
    %c0_5 = arith.constant 0 : index
    %c0_6 = arith.constant 0 : index
    %7 = vector.load %arg4[%c0_5, %c0_6] : memref<256x8xf32, #tpu.memory_space<vmem>>, vector<256x8xf32>
    tpu.vector_store %arg4[%c0_5, %c0_6], %6 {strides = array<i32>} : memref<256x8xf32, #tpu.memory_space<vmem>>, vector<256x8xf32>,
    %8 = vector.extract_strided_slice %5 {offsets = [0, 8], sizes = [256, 8], strides = [1, 1]} : vector<256x16xf32> to vector<256x8xf32>
    %9 = vector.shape_cast %8 : vector<256x8xf32> to vector<4x64x8xf32>
    %cst_7 = arith.constant dense<0.000000e+00> : vector<4x8xf32>
    %10 = vector.multi_reduction <add>, %9, %cst_7 [1] : vector<4x64x8xf32> to vector<4x8xf32>
    %11 = vector.shape_cast %10 : vector<4x8xf32> to vector<4x1x8xf32>
    %cst_8 = arith.constant 6.400000e+01 : f32
    %12 = vector.broadcast %cst_8 : f32 to vector<4x1x8xf32>
    %13 = arith.divf %11, %12 : vector<4x1x8xf32>
    %c0_9 = arith.constant 0 : index
    %c0_10 = arith.constant 0 : index
    %c0_11 = arith.constant 0 : index
    %14 = vector.load %arg5[%c0_9, %c0_10, %c0_11] : memref<4x1x8xf32, #tpu.memory_space<vmem>>, vector<4x1x8xf32>
    tpu.vector_store %arg5[%c0_9, %c0_10, %c0_11], %13 {strides = array<i32>} : memref<4x1x8xf32, #tpu.memory_space<vmem>>, vector<4x1x8xf32>,
    return
  }
  func.func @transform_0(%arg0: i32) -> (i32, i32) {
    %c0_i32 = arith.constant 0 : i32
    %c0_i32_0 = arith.constant 0 : i32
    return %arg0, %c0_i32 : i32, i32
  }
  func.func @transform_1(%arg0: i32) -> (i32, i32) {
    %c0_i32 = arith.constant 0 : i32
    %c0_i32_0 = arith.constant 0 : i32
    %c0_i32_1 = arith.constant 0 : i32
    return %c0_i32, %c0_i32_0 : i32, i32
  }
  func.func @transform_2(%arg0: i32) -> (i32, i32) {
    %c0_i32 = arith.constant 0 : i32
    %c0_i32_0 = arith.constant 0 : i32
    %c0_i32_1 = arith.constant 0 : i32
    return %c0_i32, %c0_i32_0 : i32, i32
  }
  func.func @transform_3(%arg0: i32) -> (i32, i32) {
    %c0_i32 = arith.constant 0 : i32
    %c0_i32_0 = arith.constant 0 : i32
    return %arg0, %c0_i32 : i32, i32
  }
  func.func @transform_4(%arg0: i32) -> (i32, i32, i32) {
    %c0_i32 = arith.constant 0 : i32
    %c0_i32_0 = arith.constant 0 : i32
    %c0_i32_1 = arith.constant 0 : i32
    return %arg0, %c0_i32, %c0_i32_0 : i32, i32, i32
  }
}

</mosaic_0001>

<bundles_post_ra>
// kernel: tpu_custom_call.1
= control target key start
LH: loop header
LB: loop body
LE: loop exit
PB: predicated region body
PF: predicated region fallthrough
CT: control target
= control target key end

     0   :  { %10 = vsyncpa [#allocation3], 0  ;;  %s2171_s0 = inlined_call_operand.hbm [shape: f32[512,512], index: 0, kind: input, shape index: {}]   ;;  %s2172_s1 = inlined_call_operand.vmem [shape: f32[512,16], index: 1, kind: input, shape index: {}]   ;;  %s2173_s2 = inlined_call_operand.vmem [shape: f32[1,16], index: 2, kind: input, shape index: {}]   ;;  %s2174_s3 = inlined_call_operand.vmem [shape: f32[512,8], index: 3, kind: output, shape index: {0}]   ;;  %s2175_s4 = inlined_call_operand.hbm [shape: f32[8,1,8], index: 4, kind: output, shape index: {1}]  }
   0x1   :  { %12 = vsyncpa [#allocation3 + $0x1], 0 }
   0x2   :  { %13 = vsyncpa [#allocation4], 0 }
   0x3   :  { %15 = vsyncpa [#allocation4 + $0x1], 0  ;;  %s1511_s15 = smov 0   ;;  %s1513_s16 = smov 0  }
   0x4   :  { %s1515_s17 = smov 0   ;;  %s1517_s18 = smov 0  }
   0x5 LB: > { %s1532_s19 = sadd.s32 4294967295, %s1476_s18   ;;  %s1147_s20 = sadd.s32 4294967294, %s1476_s18   ;;  %s1476_s18 = sphi %s1517_s18, %s2188_s18   ;;  %s1472_s17 = sphi %s1515_s17, %s2187_s17   ;;  %s1468_s16 = sphi %s1513_s16, %s2186_s16   ;;  %s1464_s15 = sphi %s1511_s15, %s2185_s15  }
   0x6   : > { %s1536_s21 = sadd.s32 1, %s1476_s18   ;;  %s28_s22 = sadd.s32 1, %s1472_s17 }
   0x7   : > { %s25_s23 = ssub.s32 %s1476_s18, %s1536_s21  ;;  %p35_p0 = scmp.ne.s32.totalorder %s1472_s17, %s1468_s16 }
   0x8   : > { %p26_p1 = scmp.eq.s32.totalorder %s25_s23, 0  ;;  %p36_p2 = scmp.eq.s32.totalorder %s1476_s18, 0 }
   0x9   : > { %p41_p3 = scmp.ne.s32.totalorder %s1468_s16, %s1464_s15  ;;  %p42_p4 = scmp.eq.s32.totalorder %s1532_s19, 0 }
   0xa   : > { %s1548_s24 = scalar_select %p26_p1, %s1472_s17, %s28_s22  }
   0xb   : > { %p1550_p5 = por %p36_p2, %p35_p0  ;;  %p1554_p6 = por %p42_p4, %p41_p3 }
   0xc   : > { %p133_p7 = scmp.eq.s32.totalorder %s1532_s19, 1  ;;  %p139_p8 = scmp.eq.s32.totalorder %s1147_s20, 1 }
   0xd   : > { %p1340_p10 = scmp.lt.s32.totalorder %s1476_s18, 2  ;;  %s165_s29 = sand.u32 1, %s1472_s17  }
   0xe   : > { %p1561_p11 = por %p133_p7, %p35_p0  ;;  %p1565_p12 = por %p139_p8, %p41_p3 }
   0xf   : > { %s1166_s30 = sshll.u32 %s1476_s18, 14  ;;  %s1150_s5 = sshll.u32 %s165_s29, 10 }
  0x10   : > { %s2179_s27 = scalar_select %p1561_p11, 1, 0 }
  0x11   : > { %s2180_s28 = scalar_select %p1565_p12, 1, 0 }
  0x12   : > { %s1574_s8 = scalar_lea.hbm %s2171_s0, %s1166_s30  ;;  %s169_s9 = scalar_lea.vmem [#allocation2], %s1150_s5 }
  0x13   : > { %s177_s10 = sshll.u32 %s169_s9, 4  ;;  %p1578_p13 = pnand %p1340_p10, %p1550_p5  ;;  %s1582_s10 = int_to_ptr.vmem [resolvable:$true] %s177_s10 }
  0x14   : > { %s1584_s12 = scalar_lea.sflag [#allocation3], %s165_s29  ;;  %s1380_s13 = scalar_lea.hbm %s1574_s8, 16384 }
  0x15   : > { %p1381_p0 = scmp.ne.s32.totalorder %s1574_s8, %s1380_s13  ;;  %p1382_p1 = pneg %p1578_p13 }
  0x16   : > { %s1385_s22 = scalar_lea.hbm %s2171_s0, 32768  ;;  %p1386_p4 = scmp.lt.u32.totalorder %s1574_s8, %s2171_s0 }
  0x17   : > { %p1383_p2 = pnand %p1382_p1, %p1381_p0  ;;  %p1387_p5 = scmp.lt.u32.totalorder %s1385_s22, %s1380_s13 }
  0x18   : > { %p1389_p8 = scmp.lt.u32.totalorder %s1380_s13, %s1574_s8 }
  0x19   : > { %p1384_p3 = pneg %p1383_p2  ;;  %p1388_p7 = por %p1387_p5, %p1386_p4 }
  0x1b   : > { %p1390_p10 = por %p1389_p8, %p1388_p7 }
  0x1d   : > { %p1391_p9 = pnand %p1390_p10, %p1384_p3 }
  0x1f   : > { %1394 = shalt.err (!%p1391_p9)
}
  0x20   : > { %s1395_s29 = scalar_lea.vmem %s1582_s10, 16384  ;;  %s1478_s30 = smov [#allocation2]  }
  0x21   : > { %p1396_p0 = scmp.ne.s32.totalorder %s1582_s10, %s1395_s29  ;;  %s1400_s5 = sshll.u32 %s1478_s30, 4  ;;  %s1401_s5 = int_to_ptr.vmem [resolvable:$false] %s1400_s5 }
  0x22   : > { %s1402_s6 = scalar_lea.vmem %s1401_s5, 32768  ;;  %p1403_p11 = scmp.lt.s32.totalorder %s1582_s10, %s1401_s5 }
  0x23   : > { %p1398_p2 = pnand %p1396_p0, %p1382_p1  ;;  %p1404_p4 = scmp.lt.s32.totalorder %s1402_s6, %s1395_s29 }
  0x25   : > { %p1399_p12 = pneg %p1398_p2  ;;  %p1405_p5 = por %p1404_p4, %p1403_p11 }
  0x27   : > { %p1406_p7 = pnand %p1405_p5, %p1399_p12 }
  0x29   : > { %1409 = shalt.err (!%p1406_p7)
}
  0x2a   : > { %s1479_s7 = smov 512   ;;  %s1480_s9 = smov 32  }
  0x2b   : > { %1335 = dma.hbm_to_vmem [thread:$0]  (!%p1578_p13), %s1574_s8, 16384, %s1582_s10, %s1584_s12, %s1479_s7, %s1479_s7, %s1480_s9  }
  0x2c   : > { %p1154_p9 = scmp.ge.s32.totalorder %s1476_s18, 1  ;;  %p185_p1 = scmp.lt.s32.totalorder %s1476_s18, 3 }
  0x2e   : > { %p186_p3 = pnand %p1154_p9, %p185_p1 }
  0x2f   : > { %s1615_s13 = sand.u32 (!%p186_p3), 1, %s1468_s16  }
  0x30   : > { %189 = sbr.rel (%p186_p3) target bundleno = 609 (0x261), region = 32  ;;  %s1155_s14 = sshll.u32 (!%p186_p3), %s1615_s13, 10 }
  0x31   : > { %s192_s20 = scalar_lea.sflag (!%p186_p3), [#allocation3], %s1615_s13  ;;  %s1619_s22 = scalar_lea.vmem (!%p186_p3), [#allocation2], %s1155_s14 }
  0x37   : > { %1455 = dma.done.wait (%p1554_p6), %s192_s20, 16384  }
  0x38   : > { %1457 = vsyncadd (%p1554_p6), %s192_s20, 4294950912  ;;  %v1481_v0 = vmov 0.0|0.0   ;;  %v361_v1 = vld [vmem:[%s2172_s1] sm:$0xff]  ;;  %v362_v2 = vld [vmem:[%s2172_s1 + $0x8] sm:$0xff]  ;;  %s1157_s30 = sshll.u32 %s1532_s19, 5  ;;  %vm882_vm0 = vcmask 64512  }
  0x39   : > { %1168 = vmatprep.subr.bf16.mxu1 %v1481_v0  ;;  %1216 = vmatprep.subr.bf16.mxu0 %v1481_v0  ;;  %v393_v3 = vld [vmem:[%s2172_s1 + $0x100] sm:$0xff]  ;;  %v1169_v4 = vpack.c.bf16 %v362_v2, %v361_v1  ;;  %v394_v5 = vld [vmem:[%s2172_s1 + $0x108] sm:$0xff]  ;;  %v363_v6 = vld [vmem:[%s2172_s1 + $0x10] sm:$0xff]  ;;  %p227_p6 = scmp.lt.s32.totalorder %s1157_s30, 63  ;;  %vm915_vm1 = vcmask 130112   ;;  %s1482_s20 = smov 120  }
  0x3a   : > { %v364_v7 = vld [vmem:[%s2172_s1 + $0x18] sm:$0xff]  ;;  %v1217_v8 = vpack.c.bf16 %v394_v5, %v393_v3  ;;  %v395_v9 = vld [vmem:[%s2172_s1 + $0x110] sm:$0xff]  ;;  %v365_v13 = vld [vmem:[%s2172_s1 + $0x20] sm:$0xff]  ;;  %s1156_s8 = sshll.u32 %s1615_s13, 2  ;;  %vm1021_vm2 = vcmask 57344   ;;  %s1167_s12 = sshll.u32 %s1532_s19, 6 }
  0x3b   : > { %v396_v10 = vld [vmem:[%s2172_s1 + $0x118] sm:$0xff]  ;;  %1170 = vmatpush1.bf16.msra.mxu1 %v1169_v4  ;;  %v1172_v11 = vpack.c.bf16 %v364_v7, %v363_v6  ;;  %v366_v14 = vld [vmem:[%s2172_s1 + $0x28] sm:$0xff]  ;;  %v397_v15 = vld [vmem:[%s2172_s1 + $0x120] sm:$0xff]  ;;  %s2190_s30 = smov (!%p227_p6, %s1157_s30), 63  ;;  %s224_s10 = scalar_lea.vmem [#allocation5], %s1156_s8 }
  0x3c   : > { %1218 = vmatpush1.bf16.msra.mxu0 %v1217_v8  ;;  %1171 = vmatprep.subr.bf16.mxu1 %v1481_v0  ;;  %v1220_v12 = vpack.c.bf16 %v396_v10, %v395_v9  ;;  %v398_v16 = vld [vmem:[%s2172_s1 + $0x128] sm:$0xff]  ;;  %v1175_v17 = vpack.c.bf16 %v366_v14, %v365_v13  ;;  %v367_v19 = vld [vmem:[%s2172_s1 + $0x30] sm:$0xff]  ;;  %v368_v20 = vld [vmem:[%s2172_s1 + $0x38] sm:$0xff]  ;;  %s1158_s7 = sshll.u32 %s2190_s30, 3  ;;  %s1049_s11 = sshll.u32 %s224_s10, 4  ;;  %s2122_s11 = int_to_ptr.vmem [resolvable:$true] %s1049_s11 }
  0x3d   : > { %1219 = vmatprep.subr.bf16.mxu0 %v1481_v0  ;;  %v1223_v18 = vpack.c.bf16 %v398_v16, %v397_v15  ;;  %v399_v21 = vld [vmem:[%s2172_s1 + $0x130] sm:$0xff]  ;;  %v400_v22 = vld [vmem:[%s2172_s1 + $0x138] sm:$0xff]  ;;  %v1178_v23 = vpack.c.bf16 %v368_v20, %v367_v19  ;;  %v369_v25 = vld [vmem:[%s2172_s1 + $0x40] sm:$0xff]  ;;  %s2127_s26 = scalar_lea.hbm %s2175_s4, %s1167_s12  ;;  %s1032_s29 = scalar_lea.sflag [#allocation4], %s1615_s13 }
  0x3e   : > { %v1226_v24 = vpack.c.bf16 %v400_v22, %v399_v21  ;;  %v370_v26 = vld [vmem:[%s2172_s1 + $0x48] sm:$0xff]  ;;  %v401_v27 = vld [vmem:[%s2172_s1 + $0x140] sm:$0xff]  ;;  %v371_v31 = vld [vmem:[%s2172_s1 + $0x50] sm:$0xff]  ;;  %s1410_s30 = scalar_lea.vmem %s2122_s11, 64  ;;  %p2182_p12 = scmp.ne.s32.totalorder %s2179_s27, 0 }
  0x3f   : > { %1173 = vmatpush1.bf16.msra.mxu1 %v1172_v11  ;;  %v402_v28 = vld [vmem:[%s2172_s1 + $0x148] sm:$0xff]  ;;  %v1181_v29 = vpack.c.bf16 %v370_v26, %v369_v25  ;;  %v372_v32 = vld [vmem:[%s2172_s1 + $0x58] sm:$0xff]  ;;  %v403_v33 = vld [vmem:[%s2172_s1 + $0x150] sm:$0xff]  ;;  %p1411_p11 = scmp.ne.s32.totalorder %s2122_s11, %s1410_s30  ;;  %s1483_s5 = smov [#allocation5]  }
  0x40   : > { %1221 = vmatpush1.bf16.msra.mxu0 %v1220_v12  ;;  %1174 = vmatprep.subr.bf16.mxu1 %v1481_v0  ;;  %v1229_v30 = vpack.c.bf16 %v402_v28, %v401_v27  ;;  %v404_v34 = vld [vmem:[%s2172_s1 + $0x158] sm:$0xff]  ;;  %v1184_v35 = vpack.c.bf16 %v372_v32, %v371_v31  ;;  %v373_v37 = vld [vmem:[%s2172_s1 + $0x60] sm:$0xff]  ;;  %v374_v38 = vld [vmem:[%s2172_s1 + $0x68] sm:$0xff]  ;;  %s1414_s19 = sshll.u32 %s1483_s5, 4  ;;  %s1415_s19 = int_to_ptr.vmem [resolvable:$false] %s1414_s19 }
  0x41   : > { %1222 = vmatprep.subr.bf16.mxu0 %v1481_v0  ;;  %v1232_v36 = vpack.c.bf16 %v404_v34, %v403_v33  ;;  %v405_v39 = vld [vmem:[%s2172_s1 + $0x160] sm:$0xff]  ;;  %v406_v40 = vld [vmem:[%s2172_s1 + $0x168] sm:$0xff]  ;;  %v236_v42 = vld [vmem:[%s1619_s22 + $0x18] sm:$0xff]  ;;  %v1187_v43 = vpack.c.bf16 %v374_v38, %v373_v37  ;;  %p1412_p13 = pnand %p1411_p11, %p2182_p12  ;;  %s1416_s6 = scalar_lea.vmem %s1415_s19, 128 }
  0x42   : > { %v234_v41 = vld [vmem:[%s1619_s22 + $0x8] sm:$0xff]  ;;  %721 = vmatprep.mubr.f32.mxu0 %v236_v42  ;;  %v1235_v44 = vpack.c.bf16 %v406_v40, %v405_v39  ;;  %v375_v45 = vld [vmem:[%s2172_s1 + $0x70] sm:$0xff]  ;;  %v376_v46 = vld [vmem:[%s2172_s1 + $0x78] sm:$0xff]  ;;  %p1417_p10 = scmp.lt.s32.totalorder %s2122_s11, %s1415_s19  ;;  %p1418_p0 = scmp.lt.s32.totalorder %s1416_s6, %s1410_s30 }
  0x43   : > { %1176 = vmatpush1.bf16.msra.mxu1 %v1175_v17  ;;  %496 = vmatprep.mubr.f32.mxu1 %v234_v41  ;;  %v407_v47 = vld [vmem:[%s2172_s1 + $0x170] sm:$0xff]  ;;  %v408_v48 = vld [vmem:[%s2172_s1 + $0x178] sm:$0xff]  ;;  %v1190_v49 = vpack.c.bf16 %v376_v46, %v375_v45  ;;  %v377_v51 = vld [vmem:[%s2172_s1 + $0x80] sm:$0xff]  ;;  %p1413_p8 = pneg %p1412_p13 }
  0x44   : > { %1224 = vmatpush1.bf16.msra.mxu0 %v1223_v18  ;;  %1177 = vmatprep.subr.bf16.mxu1 %v1481_v0  ;;  %v1238_v50 = vpack.c.bf16 %v408_v48, %v407_v47  ;;  %v378_v52 = vld [vmem:[%s2172_s1 + $0x88] sm:$0xff]  ;;  %v409_v53 = vld [vmem:[%s2172_s1 + $0x180] sm:$0xff]  ;;  %v379_v57 = vld [vmem:[%s2172_s1 + $0x90] sm:$0xff]  ;;  %p1419_p2 = por %p1418_p0, %p1417_p10 }
  0x45   : > { %1225 = vmatprep.subr.bf16.mxu0 %v1481_v0  ;;  %v410_v54 = vld [vmem:[%s2172_s1 + $0x188] sm:$0xff]  ;;  %v1193_v55 = vpack.c.bf16 %v378_v52, %v377_v51  ;;  %v380_v58 = vld [vmem:[%s2172_s1 + $0x98] sm:$0xff]  ;;  %v411_v59 = vld [vmem:[%s2172_s1 + $0x190] sm:$0xff] }
  0x46   : > { %v1241_v56 = vpack.c.bf16 %v410_v54, %v409_v53  ;;  %v412_v60 = vld [vmem:[%s2172_s1 + $0x198] sm:$0xff]  ;;  %v1196_v61 = vpack.c.bf16 %v380_v58, %v379_v57  ;;  %v381_v63 = vld [vmem:[%s2172_s1 + $0xa0] sm:$0xff]  ;;  %v382_v1 = vld [vmem:[%s2172_s1 + $0xa8] sm:$0xff]  ;;  %p1420_p4 = pnand %p1419_p2, %p1413_p8 }
  0x47   : > { %1179 = vmatpush1.bf16.msra.mxu1 %v1178_v23  ;;  %v1244_v62 = vpack.c.bf16 %v412_v60, %v411_v59  ;;  %v413_v2 = vld [vmem:[%s2172_s1 + $0x1a0] sm:$0xff]  ;;  %v414_v3 = vld [vmem:[%s2172_s1 + $0x1a8] sm:$0xff]  ;;  %v1199_v4 = vpack.c.bf16 %v382_v1, %v381_v63  ;;  %v383_v6 = vld [vmem:[%s2172_s1 + $0xb0] sm:$0xff] }
  0x48   : > { %1227 = vmatpush1.bf16.msra.mxu0 %v1226_v24  ;;  %1180 = vmatprep.subr.bf16.mxu1 %v1481_v0  ;;  %v1247_v5 = vpack.c.bf16 %v414_v3, %v413_v2  ;;  %v384_v7 = vld [vmem:[%s2172_s1 + $0xb8] sm:$0xff]  ;;  %v415_v8 = vld [vmem:[%s2172_s1 + $0x1b0] sm:$0xff]  ;;  %v385_v12 = vld [vmem:[%s2172_s1 + $0xc0] sm:$0xff] }
  0x49   : > { %1228 = vmatprep.subr.bf16.mxu0 %v1481_v0  ;;  %v416_v9 = vld [vmem:[%s2172_s1 + $0x1b8] sm:$0xff]  ;;  %v1202_v10 = vpack.c.bf16 %v384_v7, %v383_v6  ;;  %v386_v13 = vld [vmem:[%s2172_s1 + $0xc8] sm:$0xff]  ;;  %v417_v14 = vld [vmem:[%s2172_s1 + $0x1c0] sm:$0xff] }
  0x4a   : > { %v1250_v11 = vpack.c.bf16 %v416_v9, %v415_v8  ;;  %v418_v15 = vld [vmem:[%s2172_s1 + $0x1c8] sm:$0xff]  ;;  %v1205_v16 = vpack.c.bf16 %v386_v13, %v385_v12  ;;  %v387_v18 = vld [vmem:[%s2172_s1 + $0xd0] sm:$0xff]  ;;  %v388_v19 = vld [vmem:[%s2172_s1 + $0xd8] sm:$0xff] }
  0x4b   : > { %1182 = vmatpush1.bf16.msra.mxu1 %v1181_v29  ;;  %v1253_v17 = vpack.c.bf16 %v418_v15, %v417_v14  ;;  %v419_v20 = vld [vmem:[%s2172_s1 + $0x1d0] sm:$0xff]  ;;  %v420_v21 = vld [vmem:[%s2172_s1 + $0x1d8] sm:$0xff]  ;;  %v1208_v22 = vpack.c.bf16 %v388_v19, %v387_v18  ;;  %v389_v24 = vld [vmem:[%s2172_s1 + $0xe0] sm:$0xff] }
  0x4c   : > { %1230 = vmatpush1.bf16.msra.mxu0 %v1229_v30  ;;  %1183 = vmatprep.subr.bf16.mxu1 %v1481_v0  ;;  %v1256_v23 = vpack.c.bf16 %v420_v21, %v419_v20  ;;  %v390_v25 = vld [vmem:[%s2172_s1 + $0xe8] sm:$0xff]  ;;  %v421_v26 = vld [vmem:[%s2172_s1 + $0x1e0] sm:$0xff]  ;;  %v391_v30 = vld [vmem:[%s2172_s1 + $0xf0] sm:$0xff] }
  0x4d   : > { %1231 = vmatprep.subr.bf16.mxu0 %v1481_v0  ;;  %v422_v27 = vld [vmem:[%s2172_s1 + $0x1e8] sm:$0xff]  ;;  %v1211_v28 = vpack.c.bf16 %v390_v25, %v389_v24  ;;  %v392_v31 = vld [vmem:[%s2172_s1 + $0xf8] sm:$0xff]  ;;  %v423_v32 = vld [vmem:[%s2172_s1 + $0x1f0] sm:$0xff] }
  0x4e   : > { %v1259_v29 = vpack.c.bf16 %v422_v27, %v421_v26  ;;  %v424_v33 = vld [vmem:[%s2172_s1 + $0x1f8] sm:$0xff]  ;;  %v1214_v34 = vpack.c.bf16 %v392_v31, %v391_v30  ;;  %v235_v37 = vld [vmem:[%s1619_s22 + $0x10] sm:$0xff]  ;;  %v238_v38 = vld [vmem:[%s1619_s22 + $0x28] sm:$0xff] }
  0x4f   : > { %1185 = vmatpush1.bf16.msra.mxu1 %v1184_v35  ;;  %v1262_v35 = vpack.c.bf16 %v424_v33, %v423_v32  ;;  %v240_v39 = vld [vmem:[%s1619_s22 + $0x38] sm:$0xff]  ;;  %v237_v40 = vld [vmem:[%s1619_s22 + $0x20] sm:$0xff]  ;;  %v239_v41 = vld [vmem:[%s1619_s22 + $0x30] sm:$0xff] }
  0x50   : > { %1233 = vmatpush1.bf16.msra.mxu0 %v1232_v36  ;;  %1186 = vmatprep.subr.bf16.mxu1 %v1481_v0  ;;  %v233_v36 = vld [vmem:[%s1619_s22] sm:$0xff]  ;;  %v242_v42 = vld [vmem:[%s1619_s22 + $0x48] sm:$0xff]  ;;  %v248_v46 = vld [vmem:[%s1619_s22 + $0x78] sm:$0xff] }
  0x51   : > { %1234 = vmatprep.subr.bf16.mxu0 %v1481_v0  ;;  %v246_v45 = vld [vmem:[%s1619_s22 + $0x68] sm:$0xff]  ;;  %v245_v47 = vld [vmem:[%s1619_s22 + $0x60] sm:$0xff]  ;;  %v247_v48 = vld [vmem:[%s1619_s22 + $0x70] sm:$0xff] }
  0x52   : > { %v249_v51 = vld [vmem:[%s1619_s22 + $0x80] sm:$0xff]  ;;  %v251_v52 = vld [vmem:[%s1619_s22 + $0x90] sm:$0xff]  ;;  %v254_v53 = vld [vmem:[%s1619_s22 + $0xa8] sm:$0xff] }
  0x53   : > { %1188 = vmatpush1.bf16.msra.mxu1 %v1187_v43  ;;  %v241_v43 = vld [vmem:[%s1619_s22 + $0x40] sm:$0xff]  ;;  %v256_v54 = vld [vmem:[%s1619_s22 + $0xb8] sm:$0xff]  ;;  %v258_v57 = vld [vmem:[%s1619_s22 + $0xc8] sm:$0xff] }
  0x54   : > { %1236 = vmatpush1.bf16.msra.mxu0 %v1235_v44  ;;  %1189 = vmatprep.subr.bf16.mxu1 %v1481_v0  ;;  %v243_v44 = vld [vmem:[%s1619_s22 + $0x50] sm:$0xff]  ;;  %v260_v58 = vld [vmem:[%s1619_s22 + $0xd8] sm:$0xff]  ;;  %v257_v59 = vld [vmem:[%s1619_s22 + $0xc0] sm:$0xff] }
  0x55   : > { %1237 = vmatprep.subr.bf16.mxu0 %v1481_v0  ;;  %v259_v60 = vld [vmem:[%s1619_s22 + $0xd0] sm:$0xff]  ;;  %v261_v63 = vld [vmem:[%s1619_s22 + $0xe0] sm:$0xff]  ;;  %v266_v2 = vld [vmem:[%s1619_s22 + $0x108] sm:$0xff] }
  0x56   : > { %v263_v1 = vld [vmem:[%s1619_s22 + $0xf0] sm:$0xff]  ;;  %v268_v3 = vld [vmem:[%s1619_s22 + $0x118] sm:$0xff]  ;;  %v270_v6 = vld [vmem:[%s1619_s22 + $0x128] sm:$0xff] }
  0x57   : > { %1191 = vmatpush1.bf16.msra.mxu1 %v1190_v49  ;;  %v250_v49 = vld [vmem:[%s1619_s22 + $0x88] sm:$0xff]  ;;  %v272_v7 = vld [vmem:[%s1619_s22 + $0x138] sm:$0xff]  ;;  %v269_v8 = vld [vmem:[%s1619_s22 + $0x120] sm:$0xff] }
  0x58   : > { %1239 = vmatpush1.bf16.msra.mxu0 %v1238_v50  ;;  %1192 = vmatprep.subr.bf16.mxu1 %v1481_v0  ;;  %v252_v50 = vld [vmem:[%s1619_s22 + $0x98] sm:$0xff]  ;;  %v271_v9 = vld [vmem:[%s1619_s22 + $0x130] sm:$0xff]  ;;  %v273_v12 = vld [vmem:[%s1619_s22 + $0x140] sm:$0xff] }
  0x59   : > { %1240 = vmatprep.subr.bf16.mxu0 %v1481_v0  ;;  %v275_v13 = vld [vmem:[%s1619_s22 + $0x150] sm:$0xff]  ;;  %v278_v14 = vld [vmem:[%s1619_s22 + $0x168] sm:$0xff]  ;;  %v280_v15 = vld [vmem:[%s1619_s22 + $0x178] sm:$0xff] }
  0x5a   : > { %v282_v18 = vld [vmem:[%s1619_s22 + $0x188] sm:$0xff]  ;;  %v284_v19 = vld [vmem:[%s1619_s22 + $0x198] sm:$0xff]  ;;  %v281_v20 = vld [vmem:[%s1619_s22 + $0x180] sm:$0xff] }
  0x5b   : > { %1194 = vmatpush1.bf16.msra.mxu1 %v1193_v55  ;;  %v253_v55 = vld [vmem:[%s1619_s22 + $0xa0] sm:$0xff]  ;;  %v283_v21 = vld [vmem:[%s1619_s22 + $0x190] sm:$0xff]  ;;  %v290_v26 = vld [vmem:[%s1619_s22 + $0x1c8] sm:$0xff] }
  0x5c   : > { %1242 = vmatpush1.bf16.msra.mxu0 %v1241_v56  ;;  %1195 = vmatprep.subr.bf16.mxu1 %v1481_v0  ;;  %v255_v56 = vld [vmem:[%s1619_s22 + $0xb0] sm:$0xff]  ;;  %v285_v24 = vld [vmem:[%s1619_s22 + $0x1a0] sm:$0xff]  ;;  %v292_v27 = vld [vmem:[%s1619_s22 + $0x1d8] sm:$0xff] }
  0x5d   : > { %1243 = vmatprep.subr.bf16.mxu0 %v1481_v0  ;;  %v287_v25 = vld [vmem:[%s1619_s22 + $0x1b0] sm:$0xff]  ;;  %v294_v30 = vld [vmem:[%s1619_s22 + $0x1e8] sm:$0xff]  ;;  %v296_v31 = vld [vmem:[%s1619_s22 + $0x1f8] sm:$0xff] }
  0x5e   : > { %v293_v32 = vld [vmem:[%s1619_s22 + $0x1e0] sm:$0xff]  ;;  %v295_v33 = vld [vmem:[%s1619_s22 + $0x1f0] sm:$0xff] }
  0x5f   : > { %1197 = vmatpush1.bf16.msra.mxu1 %v1196_v61  ;;  %v262_v61 = vld [vmem:[%s1619_s22 + $0xe8] sm:$0xff] }
  0x60   : > { %1245 = vmatpush1.bf16.msra.mxu0 %v1244_v62  ;;  %1198 = vmatprep.subr.bf16.mxu1 %v1481_v0  ;;  %v264_v62 = vld [vmem:[%s1619_s22 + $0xf8] sm:$0xff] }
  0x61   : > { %1246 = vmatprep.subr.bf16.mxu0 %v1481_v0 }
  0x63   : > { %1200 = vmatpush1.bf16.msra.mxu1 %v1199_v4  ;;  %v265_v4 = vld [vmem:[%s1619_s22 + $0x100] sm:$0xff] }
  0x64   : > { %1248 = vmatpush1.bf16.msra.mxu0 %v1247_v5  ;;  %1201 = vmatprep.subr.bf16.mxu1 %v1481_v0  ;;  %v267_v5 = vld [vmem:[%s1619_s22 + $0x110] sm:$0xff] }
  0x65   : > { %1249 = vmatprep.subr.bf16.mxu0 %v1481_v0 }
  0x67   : > { %1203 = vmatpush1.bf16.msra.mxu1 %v1202_v10  ;;  %v274_v10 = vld [vmem:[%s1619_s22 + $0x148] sm:$0xff] }
  0x68   : > { %1251 = vmatpush1.bf16.msra.mxu0 %v1250_v11  ;;  %1204 = vmatprep.subr.bf16.mxu1 %v1481_v0  ;;  %v276_v11 = vld [vmem:[%s1619_s22 + $0x158] sm:$0xff] }
  0x69   : > { %1252 = vmatprep.subr.bf16.mxu0 %v1481_v0 }
  0x6b   : > { %1206 = vmatpush1.bf16.msra.mxu1 %v1205_v16  ;;  %v277_v16 = vld [vmem:[%s1619_s22 + $0x160] sm:$0xff] }
  0x6c   : > { %1254 = vmatpush1.bf16.msra.mxu0 %v1253_v17  ;;  %1207 = vmatprep.subr.bf16.mxu1 %v1481_v0  ;;  %v279_v17 = vld [vmem:[%s1619_s22 + $0x170] sm:$0xff] }
  0x6d   : > { %1255 = vmatprep.subr.bf16.mxu0 %v1481_v0 }
  0x6f   : > { %1209 = vmatpush1.bf16.msra.mxu1 %v1208_v22  ;;  %v286_v22 = vld [vmem:[%s1619_s22 + $0x1a8] sm:$0xff] }
  0x70   : > { %1257 = vmatpush1.bf16.msra.mxu0 %v1256_v23  ;;  %1210 = vmatprep.subr.bf16.mxu1 %v1481_v0  ;;  %v288_v23 = vld [vmem:[%s1619_s22 + $0x1b8] sm:$0xff] }
  0x71   : > { %1258 = vmatprep.subr.bf16.mxu0 %v1481_v0 }
  0x73   : > { %1212 = vmatpush1.bf16.msra.mxu1 %v1211_v28  ;;  %v289_v28 = vld [vmem:[%s1619_s22 + $0x1c0] sm:$0xff] }
  0x74   : > { %1260 = vmatpush1.bf16.msra.mxu0 %v1259_v29  ;;  %1213 = vmatprep.subr.bf16.mxu1 %v1481_v0  ;;  %v291_v29 = vld [vmem:[%s1619_s22 + $0x1d0] sm:$0xff] }
  0x75   : > { %1261 = vmatprep.subr.bf16.mxu0 %v1481_v0  ;;  %v244_v0 = vld [vmem:[%s1619_s22 + $0x58] sm:$0xff] }
  0x77   : > { %1215 = vmatpush1.bf16.msra.mxu1 %v1214_v34  ;;  %v298_v34 = vld [vmem:[%s1619_s22 + $0x208] sm:$0xff] }
  0x78   : > { %1263 = vmatpush1.bf16.msra.mxu0 %v1262_v35  ;;  %v300_v35 = vld [vmem:[%s1619_s22 + $0x218] sm:$0xff] }
  0x7a   : > { %497 = vmatmul.mubr.f32.vlgmr.msra.gmra.mrb[0].mxu1 %v233_v36  ;;  %v297_v36 = vld [vmem:[%s1619_s22 + $0x200] sm:$0xff] }
  0x7b   : > { %722 = vmatmul.mubr.f32.vlgmr.msra.gmra.mrb[0].mxu0 %v235_v37  ;;  %501 = vmatprep.mubr.f32.mxu1 %v238_v38  ;;  %v299_v37 = vld [vmem:[%s1619_s22 + $0x210] sm:$0xff]  ;;  %v302_v38 = vld [vmem:[%s1619_s22 + $0x228] sm:$0xff] }
  0x7c   : > { %726 = vmatprep.mubr.f32.mxu0 %v240_v39  ;;  %v304_v39 = vld [vmem:[%s1619_s22 + $0x238] sm:$0xff] }
  0x7e   : > { %502 = vmatmul.mubr.f32.gmra.mrb[2].mxu1 %v237_v40  ;;  %v301_v40 = vld [vmem:[%s1619_s22 + $0x220] sm:$0xff] }
  0x7f   : > { %727 = vmatmul.mubr.f32.gmra.mrb[2].mxu0 %v239_v41  ;;  %506 = vmatprep.mubr.f32.mxu1 %v242_v42  ;;  %v303_v41 = vld [vmem:[%s1619_s22 + $0x230] sm:$0xff]  ;;  %v306_v42 = vld [vmem:[%s1619_s22 + $0x248] sm:$0xff] }
  0x80   : > { %731 = vmatprep.mubr.f32.mxu0 %v244_v0  ;;  %v308_v0 = vld [vmem:[%s1619_s22 + $0x258] sm:$0xff] }
  0x82   : > { %507 = vmatmul.mubr.f32.gmra.mrb[4].mxu1 %v241_v43  ;;  %v305_v43 = vld [vmem:[%s1619_s22 + $0x240] sm:$0xff] }
  0x83   : > { %732 = vmatmul.mubr.f32.gmra.mrb[4].mxu0 %v243_v44  ;;  %511 = vmatprep.mubr.f32.mxu1 %v246_v45  ;;  %v307_v44 = vld [vmem:[%s1619_s22 + $0x250] sm:$0xff]  ;;  %v310_v45 = vld [vmem:[%s1619_s22 + $0x268] sm:$0xff] }
  0x84   : > { %736 = vmatprep.mubr.f32.mxu0 %v248_v46  ;;  %v312_v46 = vld [vmem:[%s1619_s22 + $0x278] sm:$0xff] }
  0x86   : > { %512 = vmatmul.mubr.f32.gmra.mrb[6].mxu1 %v245_v47  ;;  %v309_v47 = vld [vmem:[%s1619_s22 + $0x260] sm:$0xff] }
  0x87   : > { %737 = vmatmul.mubr.f32.gmra.mrb[6].mxu0 %v247_v48  ;;  %516 = vmatprep.mubr.f32.mxu1 %v250_v49  ;;  %v311_v48 = vld [vmem:[%s1619_s22 + $0x270] sm:$0xff]  ;;  %v314_v49 = vld [vmem:[%s1619_s22 + $0x288] sm:$0xff] }
  0x88   : > { %741 = vmatprep.mubr.f32.mxu0 %v252_v50  ;;  %v316_v50 = vld [vmem:[%s1619_s22 + $0x298] sm:$0xff] }
  0x8a   : > { %517 = vmatmul.mubr.f32.gmra.mrb[8].mxu1 %v249_v51  ;;  %v313_v51 = vld [vmem:[%s1619_s22 + $0x280] sm:$0xff] }
  0x8b   : > { %742 = vmatmul.mubr.f32.gmra.mrb[8].mxu0 %v251_v52  ;;  %521 = vmatprep.mubr.f32.mxu1 %v254_v53  ;;  %v315_v52 = vld [vmem:[%s1619_s22 + $0x290] sm:$0xff]  ;;  %v318_v53 = vld [vmem:[%s1619_s22 + $0x2a8] sm:$0xff] }
  0x8c   : > { %746 = vmatprep.mubr.f32.mxu0 %v256_v54  ;;  %v320_v54 = vld [vmem:[%s1619_s22 + $0x2b8] sm:$0xff] }
  0x8e   : > { %522 = vmatmul.mubr.f32.gmra.mrb[10].mxu1 %v253_v55  ;;  %v317_v55 = vld [vmem:[%s1619_s22 + $0x2a0] sm:$0xff] }
  0x8f   : > { %747 = vmatmul.mubr.f32.gmra.mrb[10].mxu0 %v255_v56  ;;  %526 = vmatprep.mubr.f32.mxu1 %v258_v57  ;;  %v319_v56 = vld [vmem:[%s1619_s22 + $0x2b0] sm:$0xff]  ;;  %v322_v57 = vld [vmem:[%s1619_s22 + $0x2c8] sm:$0xff] }
  0x90   : > { %751 = vmatprep.mubr.f32.mxu0 %v260_v58  ;;  %v324_v58 = vld [vmem:[%s1619_s22 + $0x2d8] sm:$0xff] }
  0x92   : > { %527 = vmatmul.mubr.f32.gmra.mrb[12].mxu1 %v257_v59  ;;  %v321_v59 = vld [vmem:[%s1619_s22 + $0x2c0] sm:$0xff] }
  0x93   : > { %752 = vmatmul.mubr.f32.gmra.mrb[12].mxu0 %v259_v60  ;;  %531 = vmatprep.mubr.f32.mxu1 %v262_v61  ;;  %v323_v60 = vld [vmem:[%s1619_s22 + $0x2d0] sm:$0xff]  ;;  %v326_v61 = vld [vmem:[%s1619_s22 + $0x2e8] sm:$0xff] }
  0x94   : > { %756 = vmatprep.mubr.f32.mxu0 %v264_v62  ;;  %v328_v62 = vld [vmem:[%s1619_s22 + $0x2f8] sm:$0xff] }
  0x96   : > { %532 = vmatmul.mubr.f32.gmra.mrb[14].mxu1 %v261_v63  ;;  %v325_v63 = vld [vmem:[%s1619_s22 + $0x2e0] sm:$0xff] }
  0x97   : > { %757 = vmatmul.mubr.f32.gmra.mrb[14].mxu0 %v263_v1  ;;  %536 = vmatprep.mubr.f32.mxu1 %v266_v2  ;;  %v327_v1 = vld [vmem:[%s1619_s22 + $0x2f0] sm:$0xff]  ;;  %v330_v2 = vld [vmem:[%s1619_s22 + $0x308] sm:$0xff] }
  0x98   : > { %761 = vmatprep.mubr.f32.mxu0 %v268_v3  ;;  %v332_v3 = vld [vmem:[%s1619_s22 + $0x318] sm:$0xff] }
  0x9a   : > { %537 = vmatmul.mubr.f32.gmra.mrb[16].mxu1 %v265_v4  ;;  %v329_v4 = vld [vmem:[%s1619_s22 + $0x300] sm:$0xff] }
  0x9b   : > { %762 = vmatmul.mubr.f32.gmra.mrb[16].mxu0 %v267_v5  ;;  %541 = vmatprep.mubr.f32.mxu1 %v270_v6  ;;  %v331_v5 = vld [vmem:[%s1619_s22 + $0x310] sm:$0xff]  ;;  %v334_v6 = vld [vmem:[%s1619_s22 + $0x328] sm:$0xff] }
  0x9c   : > { %766 = vmatprep.mubr.f32.mxu0 %v272_v7  ;;  %v336_v7 = vld [vmem:[%s1619_s22 + $0x338] sm:$0xff] }
  0x9e   : > { %542 = vmatmul.mubr.f32.gmra.mrb[18].mxu1 %v269_v8  ;;  %v333_v8 = vld [vmem:[%s1619_s22 + $0x320] sm:$0xff] }
  0x9f   : > { %767 = vmatmul.mubr.f32.gmra.mrb[18].mxu0 %v271_v9  ;;  %546 = vmatprep.mubr.f32.mxu1 %v274_v10  ;;  %v335_v9 = vld [vmem:[%s1619_s22 + $0x330] sm:$0xff]  ;;  %v338_v10 = vld [vmem:[%s1619_s22 + $0x348] sm:$0xff] }
  0xa0   : > { %771 = vmatprep.mubr.f32.mxu0 %v276_v11  ;;  %v340_v11 = vld [vmem:[%s1619_s22 + $0x358] sm:$0xff] }
  0xa2   : > { %547 = vmatmul.mubr.f32.gmra.mrb[20].mxu1 %v273_v12  ;;  %v337_v12 = vld [vmem:[%s1619_s22 + $0x340] sm:$0xff] }
  0xa3   : > { %772 = vmatmul.mubr.f32.gmra.mrb[20].mxu0 %v275_v13  ;;  %551 = vmatprep.mubr.f32.mxu1 %v278_v14  ;;  %v339_v13 = vld [vmem:[%s1619_s22 + $0x350] sm:$0xff]  ;;  %v342_v14 = vld [vmem:[%s1619_s22 + $0x368] sm:$0xff] }
  0xa4   : > { %776 = vmatprep.mubr.f32.mxu0 %v280_v15  ;;  %v344_v15 = vld [vmem:[%s1619_s22 + $0x378] sm:$0xff] }
  0xa6   : > { %552 = vmatmul.mubr.f32.gmra.mrb[22].mxu1 %v277_v16  ;;  %v341_v16 = vld [vmem:[%s1619_s22 + $0x360] sm:$0xff] }
  0xa7   : > { %777 = vmatmul.mubr.f32.gmra.mrb[22].mxu0 %v279_v17  ;;  %556 = vmatprep.mubr.f32.mxu1 %v282_v18  ;;  %v343_v17 = vld [vmem:[%s1619_s22 + $0x370] sm:$0xff]  ;;  %v346_v18 = vld [vmem:[%s1619_s22 + $0x388] sm:$0xff] }
  0xa8   : > { %781 = vmatprep.mubr.f32.mxu0 %v284_v19  ;;  %v348_v19 = vld [vmem:[%s1619_s22 + $0x398] sm:$0xff] }
  0xaa   : > { %557 = vmatmul.mubr.f32.gmra.mrb[24].mxu1 %v281_v20  ;;  %v345_v20 = vld [vmem:[%s1619_s22 + $0x380] sm:$0xff] }
  0xab   : > { %782 = vmatmul.mubr.f32.gmra.mrb[24].mxu0 %v283_v21  ;;  %561 = vmatprep.mubr.f32.mxu1 %v286_v22  ;;  %v347_v21 = vld [vmem:[%s1619_s22 + $0x390] sm:$0xff]  ;;  %v350_v22 = vld [vmem:[%s1619_s22 + $0x3a8] sm:$0xff] }
  0xac   : > { %786 = vmatprep.mubr.f32.mxu0 %v288_v23  ;;  %v352_v23 = vld [vmem:[%s1619_s22 + $0x3b8] sm:$0xff] }
  0xae   : > { %562 = vmatmul.mubr.f32.gmra.mrb[26].mxu1 %v285_v24  ;;  %v349_v24 = vld [vmem:[%s1619_s22 + $0x3a0] sm:$0xff] }
  0xaf   : > { %787 = vmatmul.mubr.f32.gmra.mrb[26].mxu0 %v287_v25  ;;  %566 = vmatprep.mubr.f32.mxu1 %v290_v26  ;;  %v351_v25 = vld [vmem:[%s1619_s22 + $0x3b0] sm:$0xff]  ;;  %v354_v26 = vld [vmem:[%s1619_s22 + $0x3c8] sm:$0xff] }
  0xb0   : > { %791 = vmatprep.mubr.f32.mxu0 %v292_v27  ;;  %v356_v27 = vld [vmem:[%s1619_s22 + $0x3d8] sm:$0xff] }
  0xb2   : > { %567 = vmatmul.mubr.f32.gmra.mrb[28].mxu1 %v289_v28  ;;  %v353_v28 = vld [vmem:[%s1619_s22 + $0x3c0] sm:$0xff] }
  0xb3   : > { %792 = vmatmul.mubr.f32.gmra.mrb[28].mxu0 %v291_v29  ;;  %571 = vmatprep.mubr.f32.mxu1 %v294_v30  ;;  %v355_v29 = vld [vmem:[%s1619_s22 + $0x3d0] sm:$0xff]  ;;  %v358_v30 = vld [vmem:[%s1619_s22 + $0x3e8] sm:$0xff] }
  0xb4   : > { %796 = vmatprep.mubr.f32.mxu0 %v296_v31  ;;  %v360_v31 = vld [vmem:[%s1619_s22 + $0x3f8] sm:$0xff] }
  0xb6   : > { %572 = vmatmul.mubr.f32.gmra.mrb[30].mxu1 %v293_v32  ;;  %v357_v32 = vld [vmem:[%s1619_s22 + $0x3e0] sm:$0xff] }
  0xb7   : > { %797 = vmatmul.mubr.f32.gmra.mrb[30].mxu0 %v295_v33  ;;  %576 = vmatprep.mubr.f32.mxu1 %v298_v34  ;;  %v359_v33 = vld [vmem:[%s1619_s22 + $0x3f0] sm:$0xff]  ;;  %v1981_v34 = vld [vmem:[%s2173_s2] ss:$0 sm:$0xff]  ;;  %s1987_s22 = scalar_lea.vmem %s2174_s3, %s1158_s7 }
  0xb8   : > { %801 = vmatprep.mubr.f32.mxu0 %v300_v35 }
  0xba   : > { %577 = vmatmul.mubr.f32.gmra.mrb[32].mxu1 %v297_v36 }
  0xbb   : > { %802 = vmatmul.mubr.f32.gmra.mrb[32].mxu0 %v299_v37  ;;  %581 = vmatprep.mubr.f32.mxu1 %v302_v38 }
  0xbc   : > { %806 = vmatprep.mubr.f32.mxu0 %v304_v39 }
  0xbe   : > { %582 = vmatmul.mubr.f32.gmra.mrb[34].mxu1 %v301_v40 }
  0xbf   : > { %807 = vmatmul.mubr.f32.gmra.mrb[34].mxu0 %v303_v41  ;;  %586 = vmatprep.mubr.f32.mxu1 %v306_v42 }
  0xc0   : > { %811 = vmatprep.mubr.f32.mxu0 %v308_v0 }
  0xc2   : > { %587 = vmatmul.mubr.f32.gmra.mrb[36].mxu1 %v305_v43 }
  0xc3   : > { %812 = vmatmul.mubr.f32.gmra.mrb[36].mxu0 %v307_v44  ;;  %591 = vmatprep.mubr.f32.mxu1 %v310_v45 }
  0xc4   : > { %816 = vmatprep.mubr.f32.mxu0 %v312_v46 }
  0xc6   : > { %592 = vmatmul.mubr.f32.gmra.mrb[38].mxu1 %v309_v47 }
  0xc7   : > { %817 = vmatmul.mubr.f32.gmra.mrb[38].mxu0 %v311_v48  ;;  %596 = vmatprep.mubr.f32.mxu1 %v314_v49 }
  0xc8   : > { %821 = vmatprep.mubr.f32.mxu0 %v316_v50 }
  0xca   : > { %597 = vmatmul.mubr.f32.gmra.mrb[40].mxu1 %v313_v51 }
  0xcb   : > { %822 = vmatmul.mubr.f32.gmra.mrb[40].mxu0 %v315_v52  ;;  %601 = vmatprep.mubr.f32.mxu1 %v318_v53 }
  0xcc   : > { %826 = vmatprep.mubr.f32.mxu0 %v320_v54 }
  0xce   : > { %602 = vmatmul.mubr.f32.gmra.mrb[42].mxu1 %v317_v55 }
  0xcf   : > { %827 = vmatmul.mubr.f32.gmra.mrb[42].mxu0 %v319_v56  ;;  %606 = vmatprep.mubr.f32.mxu1 %v322_v57 }
  0xd0   : > { %831 = vmatprep.mubr.f32.mxu0 %v324_v58 }
  0xd2   : > { %607 = vmatmul.mubr.f32.gmra.mrb[44].mxu1 %v321_v59 }
  0xd3   : > { %832 = vmatmul.mubr.f32.gmra.mrb[44].mxu0 %v323_v60  ;;  %611 = vmatprep.mubr.f32.mxu1 %v326_v61 }
  0xd4   : > { %836 = vmatprep.mubr.f32.mxu0 %v328_v62 }
  0xd6   : > { %612 = vmatmul.mubr.f32.gmra.mrb[46].mxu1 %v325_v63 }
  0xd7   : > { %837 = vmatmul.mubr.f32.gmra.mrb[46].mxu0 %v327_v1  ;;  %616 = vmatprep.mubr.f32.mxu1 %v330_v2 }
  0xd8   : > { %841 = vmatprep.mubr.f32.mxu0 %v332_v3 }
  0xda   : > { %617 = vmatmul.mubr.f32.gmra.mrb[48].mxu1 %v329_v4 }
  0xdb   : > { %842 = vmatmul.mubr.f32.gmra.mrb[48].mxu0 %v331_v5  ;;  %621 = vmatprep.mubr.f32.mxu1 %v334_v6 }
  0xdc   : > { %846 = vmatprep.mubr.f32.mxu0 %v336_v7 }
  0xde   : > { %622 = vmatmul.mubr.f32.gmra.mrb[50].mxu1 %v333_v8 }
  0xdf   : > { %847 = vmatmul.mubr.f32.gmra.mrb[50].mxu0 %v335_v9  ;;  %626 = vmatprep.mubr.f32.mxu1 %v338_v10 }
  0xe0   : > { %851 = vmatprep.mubr.f32.mxu0 %v340_v11 }
  0xe2   : > { %627 = vmatmul.mubr.f32.gmra.mrb[52].mxu1 %v337_v12 }
  0xe3   : > { %852 = vmatmul.mubr.f32.gmra.mrb[52].mxu0 %v339_v13  ;;  %631 = vmatprep.mubr.f32.mxu1 %v342_v14 }
  0xe4   : > { %856 = vmatprep.mubr.f32.mxu0 %v344_v15 }
  0xe6   : > { %632 = vmatmul.mubr.f32.gmra.mrb[54].mxu1 %v341_v16 }
  0xe7   : > { %857 = vmatmul.mubr.f32.gmra.mrb[54].mxu0 %v343_v17  ;;  %636 = vmatprep.mubr.f32.mxu1 %v346_v18 }
  0xe8   : > { %861 = vmatprep.mubr.f32.mxu0 %v348_v19 }
  0xea   : > { %637 = vmatmul.mubr.f32.gmra.mrb[56].mxu1 %v345_v20 }
  0xeb   : > { %862 = vmatmul.mubr.f32.gmra.mrb[56].mxu0 %v347_v21  ;;  %641 = vmatprep.mubr.f32.mxu1 %v350_v22 }
  0xec   : > { %866 = vmatprep.mubr.f32.mxu0 %v352_v23 }
  0xee   : > { %642 = vmatmul.mubr.f32.gmra.mrb[58].mxu1 %v349_v24 }
  0xef   : > { %867 = vmatmul.mubr.f32.gmra.mrb[58].mxu0 %v351_v25  ;;  %646 = vmatprep.mubr.f32.mxu1 %v354_v26 }
  0xf0   : > { %871 = vmatprep.mubr.f32.mxu0 %v356_v27 }
  0xf2   : > { %647 = vmatmul.mubr.f32.gmra.mrb[60].mxu1 %v353_v28 }
  0xf3   : > { %872 = vmatmul.mubr.f32.gmra.mrb[60].mxu0 %v355_v29  ;;  %651 = vmatprep.mubr.f32.mxu1 %v358_v30 }
  0xf4   : > { %876 = vmatprep.mubr.f32.mxu0 %v360_v31 }
  0xf6   : > { %652 = vmatmul.mubr.f32.gmra.mrb[62].mxu1 %v357_v32 }
  0xf7   : > { %877 = vmatmul.mubr.f32.gmra.mrb[62].mxu0 %v359_v33 }
 0x14d   : > { %v498_v35 = vpop.f32.mrb[0].mxu1 }
 0x14e   : > { %v499_v36 = vadd.f32 %v1981_v34, %v498_v35  ;;  %v500_v37 = vpop.f32.mrb[1].mxu1  ;;  %v723_v38 = vpop.f32.mrb[0].mxu0 }
 0x14f   : > { %v725_v39 = vpop.f32.mrb[1].mxu0 }
 0x150   : > { %v724_v40 = vadd.f32 %v723_v38, %v499_v36 }
 0x151   : > { %v503_v41 = vpop.f32.mrb[2].mxu1 }
 0x152   : > { %883 = vst.msk [vmem:[%s1987_s22] sm:$0xff] %vm882_vm0, %v724_v40  ;;  %v504_v42 = vadd.f32 %v1981_v34, %v503_v41  ;;  %v505_v0 = vpop.f32.mrb[3].mxu1  ;;  %v728_v43 = vpop.f32.mrb[2].mxu0  ;;  %v916_v47 = vsel %vm915_vm1, %v724_v40, 0.0 }
 0x153   : > { %v730_v44 = vpop.f32.mrb[3].mxu0 }
 0x154   : > { %v729_v45 = vadd.f32 %v728_v43, %v504_v42 }
 0x155   : > { %v508_v46 = vpop.f32.mrb[4].mxu1 }
 0x156   : > { %884 = vst.msk [vmem:[%s1987_s22 + $0x8] sm:$0xff] %vm882_vm0, %v729_v45  ;;  %v917_v48 = vsel %vm915_vm1, %v729_v45, 0.0  ;;  %v509_v49 = vadd.f32 %v1981_v34, %v508_v46  ;;  %v510_v50 = vpop.f32.mrb[5].mxu1  ;;  %v733_v51 = vpop.f32.mrb[4].mxu0 }
 0x157   : > { %v918_v52 = vadd.f32 %v917_v48, %v916_v47  ;;  %v735_v53 = vpop.f32.mrb[5].mxu0 }
 0x158   : > { %v734_v54 = vadd.f32 %v733_v51, %v509_v49 }
 0x159   : > { %v513_v55 = vpop.f32.mrb[6].mxu1 }
 0x15a   : > { %885 = vst.msk [vmem:[%s1987_s22 + $0x10] sm:$0xff] %vm882_vm0, %v734_v54  ;;  %v919_v56 = vsel %vm915_vm1, %v734_v54, 0.0  ;;  %v514_v57 = vadd.f32 %v1981_v34, %v513_v55  ;;  %v515_v58 = vpop.f32.mrb[7].mxu1  ;;  %v738_v59 = vpop.f32.mrb[6].mxu0 }
 0x15b   : > { %v920_v60 = vadd.f32 %v919_v56, %v918_v52  ;;  %v740_v61 = vpop.f32.mrb[7].mxu0 }
 0x15c   : > { %v739_v62 = vadd.f32 %v738_v59, %v514_v57 }
 0x15d   : > { %v518_v63 = vpop.f32.mrb[8].mxu1 }
 0x15e   : > { %886 = vst.msk [vmem:[%s1987_s22 + $0x18] sm:$0xff] %vm882_vm0, %v739_v62  ;;  %v921_v1 = vsel %vm915_vm1, %v739_v62, 0.0  ;;  %v519_v2 = vadd.f32 %v1981_v34, %v518_v63  ;;  %v520_v3 = vpop.f32.mrb[9].mxu1  ;;  %v743_v4 = vpop.f32.mrb[8].mxu0 }
 0x15f   : > { %v922_v5 = vadd.f32 %v921_v1, %v920_v60  ;;  %v745_v6 = vpop.f32.mrb[9].mxu0 }
 0x160   : > { %v744_v7 = vadd.f32 %v743_v4, %v519_v2 }
 0x161   : > { %v523_v8 = vpop.f32.mrb[10].mxu1 }
 0x162   : > { %887 = vst.msk [vmem:[%s1987_s22 + $0x20] sm:$0xff] %vm882_vm0, %v744_v7  ;;  %v923_v9 = vsel %vm915_vm1, %v744_v7, 0.0  ;;  %v524_v10 = vadd.f32 %v1981_v34, %v523_v8  ;;  %v525_v11 = vpop.f32.mrb[11].mxu1  ;;  %v748_v12 = vpop.f32.mrb[10].mxu0 }
 0x163   : > { %v924_v13 = vadd.f32 %v923_v9, %v922_v5  ;;  %v750_v14 = vpop.f32.mrb[11].mxu0 }
 0x164   : > { %v749_v15 = vadd.f32 %v748_v12, %v524_v10 }
 0x165   : > { %v528_v16 = vpop.f32.mrb[12].mxu1 }
 0x166   : > { %888 = vst.msk [vmem:[%s1987_s22 + $0x28] sm:$0xff] %vm882_vm0, %v749_v15  ;;  %v925_v17 = vsel %vm915_vm1, %v749_v15, 0.0  ;;  %v529_v18 = vadd.f32 %v1981_v34, %v528_v16  ;;  %v530_v19 = vpop.f32.mrb[13].mxu1  ;;  %v753_v20 = vpop.f32.mrb[12].mxu0 }
 0x167   : > { %v926_v21 = vadd.f32 %v925_v17, %v924_v13  ;;  %v755_v22 = vpop.f32.mrb[13].mxu0 }
 0x168   : > { %v754_v23 = vadd.f32 %v753_v20, %v529_v18 }
 0x169   : > { %v533_v24 = vpop.f32.mrb[14].mxu1 }
 0x16a   : > { %889 = vst.msk [vmem:[%s1987_s22 + $0x30] sm:$0xff] %vm882_vm0, %v754_v23  ;;  %v927_v25 = vsel %vm915_vm1, %v754_v23, 0.0  ;;  %v534_v26 = vadd.f32 %v1981_v34, %v533_v24  ;;  %v535_v27 = vpop.f32.mrb[15].mxu1  ;;  %v758_v28 = vpop.f32.mrb[14].mxu0 }
 0x16b   : > { %v928_v29 = vadd.f32 %v927_v25, %v926_v21  ;;  %v760_v30 = vpop.f32.mrb[15].mxu0 }
 0x16c   : > { %v759_v31 = vadd.f32 %v758_v28, %v534_v26 }
 0x16d   : > { %v538_v32 = vpop.f32.mrb[16].mxu1 }
 0x16e   : > { %890 = vst.msk [vmem:[%s1987_s22 + $0x38] sm:$0xff] %vm882_vm0, %v759_v31  ;;  %v929_v33 = vsel %vm915_vm1, %v759_v31, 0.0  ;;  %v539_v35 = vadd.f32 %v1981_v34, %v538_v32  ;;  %v540_v36 = vpop.f32.mrb[17].mxu1  ;;  %v763_v37 = vpop.f32.mrb[16].mxu0 }
 0x16f   : > { %v930_v38 = vadd.f32 %v929_v33, %v928_v29  ;;  %v765_v39 = vpop.f32.mrb[17].mxu0 }
 0x170   : > { %v764_v40 = vadd.f32 %v763_v37, %v539_v35 }
 0x171   : > { %v931_v41 = vrot.slane %v930_v38, 4  ;;  %v543_v42 = vpop.f32.mrb[18].mxu1 }
 0x172   : > { %891 = vst.msk [vmem:[%s1987_s22 + $0x40] sm:$0xff] %vm882_vm0, %v764_v40  ;;  %v544_v0 = vadd.f32 %v1981_v34, %v543_v42  ;;  %v545_v43 = vpop.f32.mrb[19].mxu1  ;;  %v768_v44 = vpop.f32.mrb[18].mxu0  ;;  %v937_v50 = vsel %vm915_vm1, %v764_v40, 0.0 }
 0x173   : > { %v932_v45 = vadd.f32 %v931_v41, %v930_v38  ;;  %v770_v46 = vpop.f32.mrb[19].mxu0 }
 0x174   : > { %v769_v47 = vadd.f32 %v768_v44, %v544_v0 }
 0x175   : > { %v548_v48 = vpop.f32.mrb[20].mxu1  ;;  %v933_v49 = vrot.slane %v932_v45, 2 }
 0x176   : > { %892 = vst.msk [vmem:[%s1987_s22 + $0x48] sm:$0xff] %vm882_vm0, %v769_v47  ;;  %v938_v51 = vsel %vm915_vm1, %v769_v47, 0.0  ;;  %v549_v52 = vadd.f32 %v1981_v34, %v548_v48  ;;  %v550_v53 = vpop.f32.mrb[21].mxu1  ;;  %v773_v54 = vpop.f32.mrb[20].mxu0 }
 0x177   : > { %v939_v55 = vadd.f32 %v938_v51, %v937_v50  ;;  %v775_v56 = vpop.f32.mrb[21].mxu0  ;;  %v934_v57 = vadd.f32 %v933_v49, %v932_v45 }
 0x178   : > { %v774_v58 = vadd.f32 %v773_v54, %v549_v52 }
 0x179   : > { %v553_v59 = vpop.f32.mrb[22].mxu1  ;;  %v935_v60 = vrot.slane %v934_v57, 1 }
 0x17a   : > { %893 = vst.msk [vmem:[%s1987_s22 + $0x50] sm:$0xff] %vm882_vm0, %v774_v58  ;;  %v940_v61 = vsel %vm915_vm1, %v774_v58, 0.0  ;;  %v554_v62 = vadd.f32 %v1981_v34, %v553_v59  ;;  %v555_v63 = vpop.f32.mrb[23].mxu1  ;;  %v778_v1 = vpop.f32.mrb[22].mxu0 }
 0x17b   : > { %v941_v2 = vadd.f32 %v940_v61, %v939_v55  ;;  %v780_v3 = vpop.f32.mrb[23].mxu0  ;;  %v936_v4 = vadd.f32 %v935_v60, %v934_v57 }
 0x17c   : > { %v779_v5 = vadd.f32 %v778_v1, %v554_v62 }
 0x17d   : > { %v558_v6 = vpop.f32.mrb[24].mxu1  ;;  %v1001_v7 = vmul.f32 0.015625, %v936_v4 }
 0x17e   : > { %894 = vst.msk [vmem:[%s1987_s22 + $0x58] sm:$0xff] %vm882_vm0, %v779_v5  ;;  %v942_v8 = vsel %vm915_vm1, %v779_v5, 0.0  ;;  %v559_v9 = vadd.f32 %v1981_v34, %v558_v6  ;;  %v560_v10 = vpop.f32.mrb[25].mxu1  ;;  %v783_v11 = vpop.f32.mrb[24].mxu0 }
 0x17f   : > { %v943_v12 = vadd.f32 %v942_v8, %v941_v2  ;;  %v785_v13 = vpop.f32.mrb[25].mxu0  ;;  %1009 = vrot.lane.b32.xlu0 %v1001_v7, %s1482_s20 }
 0x180   : > { %v784_v14 = vadd.f32 %v783_v11, %v559_v9 }
 0x181   : > { %v563_v15 = vpop.f32.mrb[26].mxu1 }
 0x182   : > { %895 = vst.msk [vmem:[%s1987_s22 + $0x60] sm:$0xff] %vm882_vm0, %v784_v14  ;;  %v944_v16 = vsel %vm915_vm1, %v784_v14, 0.0  ;;  %v564_v17 = vadd.f32 %v1981_v34, %v563_v15  ;;  %v565_v18 = vpop.f32.mrb[27].mxu1  ;;  %v788_v19 = vpop.f32.mrb[26].mxu0 }
 0x183   : > { %v945_v20 = vadd.f32 %v944_v16, %v943_v12  ;;  %v790_v21 = vpop.f32.mrb[27].mxu0 }
 0x184   : > { %v789_v22 = vadd.f32 %v788_v19, %v564_v17 }
 0x185   : > { %v568_v23 = vpop.f32.mrb[28].mxu1 }
 0x186   : > { %896 = vst.msk [vmem:[%s1987_s22 + $0x68] sm:$0xff] %vm882_vm0, %v789_v22  ;;  %v946_v24 = vsel %vm915_vm1, %v789_v22, 0.0  ;;  %v569_v25 = vadd.f32 %v1981_v34, %v568_v23  ;;  %v570_v26 = vpop.f32.mrb[29].mxu1  ;;  %v793_v27 = vpop.f32.mrb[28].mxu0 }
 0x187   : > { %v947_v28 = vadd.f32 %v946_v24, %v945_v20  ;;  %v795_v29 = vpop.f32.mrb[29].mxu0 }
 0x188   : > { %v794_v30 = vadd.f32 %v793_v27, %v569_v25 }
 0x189   : > { %v573_v31 = vpop.f32.mrb[30].mxu1 }
 0x18a   : > { %897 = vst.msk [vmem:[%s1987_s22 + $0x70] sm:$0xff] %vm882_vm0, %v794_v30  ;;  %v948_v32 = vsel %vm915_vm1, %v794_v30, 0.0  ;;  %v574_v33 = vadd.f32 %v1981_v34, %v573_v31  ;;  %v575_v35 = vpop.f32.mrb[31].mxu1  ;;  %v798_v36 = vpop.f32.mrb[30].mxu0 }
 0x18b   : > { %v949_v37 = vadd.f32 %v948_v32, %v947_v28  ;;  %v800_v38 = vpop.f32.mrb[31].mxu0 }
 0x18c   : > { %v799_v39 = vadd.f32 %v798_v36, %v574_v33 }
 0x18d   : > { %v578_v40 = vpop.f32.mrb[32].mxu1 }
 0x18e   : > { %898 = vst.msk [vmem:[%s1987_s22 + $0x78] sm:$0xff] %vm882_vm0, %v799_v39  ;;  %v950_v41 = vsel %vm915_vm1, %v799_v39, 0.0  ;;  %v579_v42 = vadd.f32 %v1981_v34, %v578_v40  ;;  %v580_v0 = vpop.f32.mrb[33].mxu1  ;;  %v803_v43 = vpop.f32.mrb[32].mxu0 }
 0x18f   : > { %v951_v44 = vadd.f32 %v950_v41, %v949_v37  ;;  %v805_v45 = vpop.f32.mrb[33].mxu0 }
 0x190   : > { %v804_v46 = vadd.f32 %v803_v43, %v579_v42 }
 0x191   : > { %v952_v47 = vrot.slane %v951_v44, 4  ;;  %v583_v48 = vpop.f32.mrb[34].mxu1 }
 0x192   : > { %899 = vst.msk [vmem:[%s1987_s22 + $0x80] sm:$0xff] %vm882_vm0, %v804_v46  ;;  %v584_v49 = vadd.f32 %v1981_v34, %v583_v48  ;;  %v585_v50 = vpop.f32.mrb[35].mxu1  ;;  %v808_v51 = vpop.f32.mrb[34].mxu0  ;;  %v958_v57 = vsel %vm915_vm1, %v804_v46, 0.0 }
 0x193   : > { %v953_v52 = vadd.f32 %v952_v47, %v951_v44  ;;  %v810_v53 = vpop.f32.mrb[35].mxu0 }
 0x194   : > { %v809_v54 = vadd.f32 %v808_v51, %v584_v49 }
 0x195   : > { %v954_v55 = vrot.slane %v953_v52, 2  ;;  %v588_v56 = vpop.f32.mrb[36].mxu1 }
 0x196   : > { %900 = vst.msk [vmem:[%s1987_s22 + $0x88] sm:$0xff] %vm882_vm0, %v809_v54  ;;  %v959_v58 = vsel %vm915_vm1, %v809_v54, 0.0  ;;  %v589_v59 = vadd.f32 %v1981_v34, %v588_v56  ;;  %v590_v60 = vpop.f32.mrb[37].mxu1  ;;  %v813_v61 = vpop.f32.mrb[36].mxu0 }
 0x197   : > { %v960_v62 = vadd.f32 %v959_v58, %v958_v57  ;;  %v815_v63 = vpop.f32.mrb[37].mxu0  ;;  %v955_v1 = vadd.f32 %v954_v55, %v953_v52 }
 0x198   : > { %v814_v2 = vadd.f32 %v813_v61, %v589_v59 }
 0x199   : > { %v593_v3 = vpop.f32.mrb[38].mxu1  ;;  %v956_v4 = vrot.slane %v955_v1, 1 }
 0x19a   : > { %901 = vst.msk [vmem:[%s1987_s22 + $0x90] sm:$0xff] %vm882_vm0, %v814_v2  ;;  %v961_v5 = vsel %vm915_vm1, %v814_v2, 0.0  ;;  %v594_v6 = vadd.f32 %v1981_v34, %v593_v3  ;;  %v595_v7 = vpop.f32.mrb[39].mxu1  ;;  %v818_v8 = vpop.f32.mrb[38].mxu0 }
 0x19b   : > { %v962_v9 = vadd.f32 %v961_v5, %v960_v62  ;;  %v820_v10 = vpop.f32.mrb[39].mxu0  ;;  %v957_v11 = vadd.f32 %v956_v4, %v955_v1 }
 0x19c   : > { %v819_v12 = vadd.f32 %v818_v8, %v594_v6 }
 0x19d   : > { %v598_v13 = vpop.f32.mrb[40].mxu1  ;;  %v1002_v14 = vmul.f32 0.015625, %v957_v11 }
 0x19e   : > { %902 = vst.msk [vmem:[%s1987_s22 + $0x98] sm:$0xff] %vm882_vm0, %v819_v12  ;;  %v963_v15 = vsel %vm915_vm1, %v819_v12, 0.0  ;;  %v599_v16 = vadd.f32 %v1981_v34, %v598_v13  ;;  %v600_v17 = vpop.f32.mrb[41].mxu1  ;;  %v823_v18 = vpop.f32.mrb[40].mxu0 }
 0x19f   : > { %v964_v19 = vadd.f32 %v963_v15, %v962_v9  ;;  %v825_v20 = vpop.f32.mrb[41].mxu0  ;;  %1011 = vrot.lane.b32.xlu0 %v1002_v14, %s1482_s20 }
 0x1a0   : > { %v824_v21 = vadd.f32 %v823_v18, %v599_v16 }
 0x1a1   : > { %v603_v22 = vpop.f32.mrb[42].mxu1 }
 0x1a2   : > { %903 = vst.msk [vmem:[%s1987_s22 + $0xa0] sm:$0xff] %vm882_vm0, %v824_v21  ;;  %v965_v23 = vsel %vm915_vm1, %v824_v21, 0.0  ;;  %v604_v24 = vadd.f32 %v1981_v34, %v603_v22  ;;  %v605_v25 = vpop.f32.mrb[43].mxu1  ;;  %v828_v26 = vpop.f32.mrb[42].mxu0 }
 0x1a3   : > { %v966_v27 = vadd.f32 %v965_v23, %v964_v19  ;;  %v830_v28 = vpop.f32.mrb[43].mxu0 }
 0x1a4   : > { %v829_v29 = vadd.f32 %v828_v26, %v604_v24 }
 0x1a5   : > { %v608_v30 = vpop.f32.mrb[44].mxu1 }
 0x1a6   : > { %904 = vst.msk [vmem:[%s1987_s22 + $0xa8] sm:$0xff] %vm882_vm0, %v829_v29  ;;  %v967_v31 = vsel %vm915_vm1, %v829_v29, 0.0  ;;  %v609_v32 = vadd.f32 %v1981_v34, %v608_v30  ;;  %v610_v33 = vpop.f32.mrb[45].mxu1  ;;  %v833_v35 = vpop.f32.mrb[44].mxu0 }
 0x1a7   : > { %v968_v36 = vadd.f32 %v967_v31, %v966_v27  ;;  %v835_v37 = vpop.f32.mrb[45].mxu0 }
 0x1a8   : > { %v834_v38 = vadd.f32 %v833_v35, %v609_v32 }
 0x1a9   : > { %v613_v39 = vpop.f32.mrb[46].mxu1 }
 0x1aa   : > { %905 = vst.msk [vmem:[%s1987_s22 + $0xb0] sm:$0xff] %vm882_vm0, %v834_v38  ;;  %v969_v40 = vsel %vm915_vm1, %v834_v38, 0.0  ;;  %v614_v41 = vadd.f32 %v1981_v34, %v613_v39  ;;  %v615_v42 = vpop.f32.mrb[47].mxu1  ;;  %v838_v0 = vpop.f32.mrb[46].mxu0 }
 0x1ab   : > { %v970_v43 = vadd.f32 %v969_v40, %v968_v36  ;;  %v840_v44 = vpop.f32.mrb[47].mxu0 }
 0x1ac   : > { %v839_v45 = vadd.f32 %v838_v0, %v614_v41 }
 0x1ad   : > { %v618_v46 = vpop.f32.mrb[48].mxu1 }
 0x1ae   : > { %906 = vst.msk [vmem:[%s1987_s22 + $0xb8] sm:$0xff] %vm882_vm0, %v839_v45  ;;  %v971_v47 = vsel %vm915_vm1, %v839_v45, 0.0  ;;  %v619_v48 = vadd.f32 %v1981_v34, %v618_v46  ;;  %v620_v49 = vpop.f32.mrb[49].mxu1  ;;  %v843_v50 = vpop.f32.mrb[48].mxu0 }
 0x1af   : > { %v972_v51 = vadd.f32 %v971_v47, %v970_v43  ;;  %v845_v52 = vpop.f32.mrb[49].mxu0 }
 0x1b0   : > { %v844_v53 = vadd.f32 %v843_v50, %v619_v48 }
 0x1b1   : > { %v973_v54 = vrot.slane %v972_v51, 4  ;;  %v623_v55 = vpop.f32.mrb[50].mxu1 }
 0x1b2   : > { %907 = vst.msk [vmem:[%s1987_s22 + $0xc0] sm:$0xff] %vm882_vm0, %v844_v53  ;;  %v624_v56 = vadd.f32 %v1981_v34, %v623_v55  ;;  %v625_v57 = vpop.f32.mrb[51].mxu1  ;;  %v848_v58 = vpop.f32.mrb[50].mxu0  ;;  %v979_v1 = vsel %vm915_vm1, %v844_v53, 0.0 }
 0x1b3   : > { %v974_v59 = vadd.f32 %v973_v54, %v972_v51  ;;  %v850_v60 = vpop.f32.mrb[51].mxu0 }
 0x1b4   : > { %v849_v61 = vadd.f32 %v848_v58, %v624_v56 }
 0x1b5   : > { %v628_v62 = vpop.f32.mrb[52].mxu1  ;;  %v975_v63 = vrot.slane %v974_v59, 2 }
 0x1b6   : > { %908 = vst.msk [vmem:[%s1987_s22 + $0xc8] sm:$0xff] %vm882_vm0, %v849_v61  ;;  %v980_v2 = vsel %vm915_vm1, %v849_v61, 0.0  ;;  %v629_v3 = vadd.f32 %v1981_v34, %v628_v62  ;;  %v630_v4 = vpop.f32.mrb[53].mxu1  ;;  %v853_v5 = vpop.f32.mrb[52].mxu0 }
 0x1b7   : > { %v981_v6 = vadd.f32 %v980_v2, %v979_v1  ;;  %v855_v7 = vpop.f32.mrb[53].mxu0  ;;  %v976_v8 = vadd.f32 %v975_v63, %v974_v59 }
 0x1b8   : > { %v854_v9 = vadd.f32 %v853_v5, %v629_v3 }
 0x1b9   : > { %v633_v10 = vpop.f32.mrb[54].mxu1  ;;  %v977_v11 = vrot.slane %v976_v8, 1 }
 0x1ba   : > { %909 = vst.msk [vmem:[%s1987_s22 + $0xd0] sm:$0xff] %vm882_vm0, %v854_v9  ;;  %v982_v12 = vsel %vm915_vm1, %v854_v9, 0.0  ;;  %v634_v13 = vadd.f32 %v1981_v34, %v633_v10  ;;  %v635_v14 = vpop.f32.mrb[55].mxu1  ;;  %v858_v15 = vpop.f32.mrb[54].mxu0 }
 0x1bb   : > { %v983_v16 = vadd.f32 %v982_v12, %v981_v6  ;;  %v860_v17 = vpop.f32.mrb[55].mxu0  ;;  %v978_v18 = vadd.f32 %v977_v11, %v976_v8 }
 0x1bc   : > { %v859_v19 = vadd.f32 %v858_v15, %v634_v13 }
 0x1bd   : > { %v638_v20 = vpop.f32.mrb[56].mxu1  ;;  %v1003_v21 = vmul.f32 0.015625, %v978_v18 }
 0x1be   : > { %910 = vst.msk [vmem:[%s1987_s22 + $0xd8] sm:$0xff] %vm882_vm0, %v859_v19  ;;  %v984_v22 = vsel %vm915_vm1, %v859_v19, 0.0  ;;  %v639_v23 = vadd.f32 %v1981_v34, %v638_v20  ;;  %v640_v24 = vpop.f32.mrb[57].mxu1  ;;  %v863_v25 = vpop.f32.mrb[56].mxu0 }
 0x1bf   : > { %v985_v26 = vadd.f32 %v984_v22, %v983_v16  ;;  %v865_v27 = vpop.f32.mrb[57].mxu0  ;;  %1013 = vrot.lane.b32.xlu1 %v1003_v21, %s1482_s20 }
 0x1c0   : > { %v864_v28 = vadd.f32 %v863_v25, %v639_v23 }
 0x1c1   : > { %v643_v29 = vpop.f32.mrb[58].mxu1 }
 0x1c2   : > { %911 = vst.msk [vmem:[%s1987_s22 + $0xe0] sm:$0xff] %vm882_vm0, %v864_v28  ;;  %v986_v30 = vsel %vm915_vm1, %v864_v28, 0.0  ;;  %v644_v31 = vadd.f32 %v1981_v34, %v643_v29  ;;  %v645_v32 = vpop.f32.mrb[59].mxu1  ;;  %v868_v33 = vpop.f32.mrb[58].mxu0 }
 0x1c3   : > { %v987_v35 = vadd.f32 %v986_v30, %v985_v26  ;;  %v870_v36 = vpop.f32.mrb[59].mxu0 }
 0x1c4   : > { %v869_v37 = vadd.f32 %v868_v33, %v644_v31 }
 0x1c5   : > { %v648_v38 = vpop.f32.mrb[60].mxu1 }
 0x1c6   : > { %912 = vst.msk [vmem:[%s1987_s22 + $0xe8] sm:$0xff] %vm882_vm0, %v869_v37  ;;  %v988_v39 = vsel %vm915_vm1, %v869_v37, 0.0  ;;  %v649_v40 = vadd.f32 %v1981_v34, %v648_v38  ;;  %v650_v41 = vpop.f32.mrb[61].mxu1  ;;  %v873_v42 = vpop.f32.mrb[60].mxu0 }
 0x1c7   : > { %v989_v0 = vadd.f32 %v988_v39, %v987_v35  ;;  %v875_v43 = vpop.f32.mrb[61].mxu0 }
 0x1c8   : > { %v874_v44 = vadd.f32 %v873_v42, %v649_v40 }
 0x1c9   : > { %v653_v45 = vpop.f32.mrb[62].mxu1 }
 0x1ca   : > { %913 = vst.msk [vmem:[%s1987_s22 + $0xf0] sm:$0xff] %vm882_vm0, %v874_v44  ;;  %v990_v46 = vsel %vm915_vm1, %v874_v44, 0.0  ;;  %v654_v47 = vadd.f32 %v1981_v34, %v653_v45  ;;  %v655_v48 = vpop.f32.mrb[63].mxu1  ;;  %v878_v49 = vpop.f32.mrb[62].mxu0 }
 0x1cb   : > { %v991_v50 = vadd.f32 %v990_v46, %v989_v0  ;;  %v880_v51 = vpop.f32.mrb[63].mxu0 }
 0x1cc   : > { %v879_v52 = vadd.f32 %v878_v49, %v654_v47 }
 0x1ce   : > { %914 = vst.msk [vmem:[%s1987_s22 + $0xf8] sm:$0xff] %vm882_vm0, %v879_v52  ;;  %v992_v53 = vsel %vm915_vm1, %v879_v52, 0.0 }
 0x1cf   : > { %v993_v54 = vadd.f32 %v992_v53, %v991_v50 }
 0x1d1   : > { %v994_v55 = vrot.slane %v993_v54, 4 }
 0x1d3   : > { %v995_v56 = vadd.f32 %v994_v55, %v993_v54 }
 0x1d5   : > { %v996_v57 = vrot.slane %v995_v56, 2 }
 0x1d7   : > { %v997_v58 = vadd.f32 %v996_v57, %v995_v56 }
 0x1d9   : > { %v998_v59 = vrot.slane %v997_v58, 1 }
 0x1db   : > { %v999_v60 = vadd.f32 %v998_v59, %v997_v58 }
 0x1dd   : > { %v1004_v61 = vmul.f32 0.015625, %v999_v60 }
 0x1df   : > { %1015 = vrot.lane.b32.xlu1 %v1004_v61, %s1482_s20 }
 0x1f1   : > { %v1010_v34 = vpop.permute.xlu0 %1009 }
 0x1f2   : > { %1022 = vst.msk [vmem:[%s224_s10] sm:$0x1] %vm1021_vm2, %v1010_v34 }
 0x211   : > { %v1012_v62 = vpop.permute.xlu0 %1011 }
 0x212   : > { %1023 = vst.msk [vmem:[%s224_s10 + $0x1] sm:$0x1] %vm1021_vm2, %v1012_v62 }
 0x231   : > { %v1014_v63 = vpop.permute.xlu1 %1013 }
 0x232   : > { %1024 = vst.msk [vmem:[%s224_s10 + $0x2] sm:$0x1] %vm1021_vm2, %v1014_v63 }
 0x251   : > { %v1016_v1 = vpop.permute.xlu1 %1015 }
 0x252   : > { %1025 = vst.msk [vmem:[%s224_s10 + $0x3] sm:$0x1] %vm1021_vm2, %v1016_v1 }
 0x253   : > { %1423 = shalt.err (!%p1420_p4)
}
 0x254   : > { %s1424_s7 = scalar_lea.hbm %s2127_s26, 64  ;;  %s1428_s22 = scalar_lea.hbm %s2175_s4, 128 }
 0x255   : > { %p1425_p5 = scmp.ne.s32.totalorder %s2127_s26, %s1424_s7  ;;  %p1429_p1 = scmp.lt.u32.totalorder %s2127_s26, %s2175_s4 }
 0x256   : > { %p1430_p3 = scmp.lt.u32.totalorder %s1428_s22, %s1424_s7  ;;  %p1432_p11 = scmp.lt.u32.totalorder %s1424_s7, %s2127_s26 }
 0x257   : > { %p1426_p7 = pnand %p1425_p5, %p2182_p12 }
 0x258   : > { %p1431_p6 = por %p1430_p3, %p1429_p1 }
 0x259   : > { %p1427_p9 = pneg %p1426_p7 }
 0x25a   : > { %p1433_p13 = por %p1432_p11, %p1431_p6 }
 0x25c   : > { %p1434_p8 = pnand %p1433_p13, %p1427_p9 }
 0x25e   : > { %1437 = shalt.err (!%p1434_p8)
}
 0x25f   : > { %s1484_s10 = smov 16   ;;  %s1485_s12 = smov 1  }
 0x260   : > { %1330 = dma.vmem_to_hbm [thread:$0]  (%p2182_p12), %s2122_s11, 64, %s2127_s26, %s1032_s29, %s1484_s10, %s1484_s10, %s1485_s12  }
 0x261 PF: > { %s1072_s23 = sand.u32 1, %s1464_s15   ;;  %p2183_p10 = scmp.ne.s32.totalorder %s2180_s28, 0 }
 0x262   : > { %p2184_p0 = scmp.ge.s32.totalorder %s1476_s18, 2  ;;  %s1073_s25 = scalar_lea.sflag [#allocation4], %s1072_s23 }
 0x264   : > { %p1337_p2 = pnand %p2184_p0, %p2183_p10 }
 0x266   : > { %1459 = dma.done.wait (!%p1337_p2), %s1073_s25, 64  }
 0x267   : > { %1461 = vsyncadd (!%p1337_p2), %s1073_s25, 4294967232  ;;  %p18_p4 = scmp.ge.s32.totalorder %s1536_s21, 4   ;;  %s2185_s15 = smov %s1468_s16 }
 0x268   : > { %s2186_s16 = smov %s1472_s17  ;;  %s2187_s17 = smov %s1548_s24 }
 0x269   : > { %s2188_s18 = smov %s1536_s21  ;;  %20 = sbr.rel (!%p18_p4) target bundleno = 5 (0x5), region = 89 }
 0x270   :  { %1078 = vsyncpa [#allocation3], 1 }
 0x271   :  { %1080 = vsyncpa [#allocation3 + $0x1], 1 }
 0x272   :  { %1081 = vsyncpa [#allocation4], 1 }
 0x273   :  { %1083 = vsyncpa [#allocation4 + $0x1], 1 }

</bundles_post_ra>
